<compile_context>
chip_gen: v7x
topology: tpu7x:2x2x1
jax: 0.10.0
libtpu: 0.0.40
codegen_flags: <defaults>
</compile_context>

<pallas_src>
import jax
import jax.numpy as jnp
from jax.experimental import pallas as pl
from jax.experimental.pallas import tpu as pltpu


# ----------------------------- Pallas kernel --------------------------------
def joint_ta_kernel(
    audio_ref, mean_hidden_ref, labels_ref,
    w1_ref, b1_ref, w2_ref, b2_ref, w3_ref, b3_ref, w4_ref, b4_ref,
    poolw_ref, poolb_ref, wt_ref, bt_ref,
    wra_ref, wrt_ref, br_ref,
    loss_ref, logits_ref,
):
    f32 = jnp.float32
    bf16 = jnp.bfloat16

    def dense(x_f32, w_ref, b_ref):
        # bf16 weights, bf16 MXU matmul, f32 accumulation, f32 bias epilogue.
        return jnp.dot(x_f32.astype(bf16), w_ref[...],
                       preferred_element_type=f32) + b_ref[...]

    # ---- DNNAudio: Linear->ReLU x3 then Linear (no ReLU on last layer) ----
    audio = audio_ref[...]                                  # (B, 128) zero-padded
    h = jnp.maximum(dense(audio, w1_ref, b1_ref), 0.0)
    h = jnp.maximum(dense(h, w2_ref, b2_ref), 0.0)
    h = jnp.maximum(dense(h, w3_ref, b3_ref), 0.0)
    audio_repr = dense(h, w4_ref, b4_ref)                   # (B, 256) f32

    # ---- fused surrogate-BERT pooler: dense(768->768) + tanh (EUP) ----
    pooled = jnp.tanh(dense(mean_hidden_ref[...], poolw_ref, poolb_ref))  # (B, 768)

    # ---- text_emb: Linear(768 -> 256) on pooled output ----
    text_repr = dense(pooled, wt_ref, bt_ref)               # (B, 256) f32

    # ---- late fusion + regression head WITHOUT concat:
    #      logits = [audio_repr | text_repr] @ wr + br
    #             = audio_repr @ wr[:256] + text_repr @ wr[256:] + br
    #      done as VPU multiply + lane reduce (N=1 MXU pass would be wasted).
    #      dropout(p=0.1) is identity in eval mode.
    logits = (jnp.sum(audio_repr * wra_ref[...], axis=1, keepdims=True)
              + jnp.sum(text_repr * wrt_ref[...], axis=1, keepdims=True)
              + br_ref[...])                                # (B, 1)
    logits_ref[...] = logits

    # ---- MSE loss against labels ----
    diff = logits - labels_ref[...]                         # (B, 1)
    loss_ref[...] = jnp.mean(diff * diff, axis=(0, 1), keepdims=True)  # (1, 1)


# ------------------------------- wrapper -------------------------------------
def joint_ta_multi_forward(audio_features, mean_hidden, labels, params):
    B, A = audio_features.shape
    audio_p = jnp.pad(audio_features.astype(jnp.float32),
                      ((0, 0), (0, 128 - A)))               # (B, 128), zeros
    labels2d = labels.reshape(B, 1).astype(jnp.float32)

    loss, logits = pl.pallas_call(
        joint_ta_kernel,
        out_shape=(
            jax.ShapeDtypeStruct((1, 1), jnp.float32),
            jax.ShapeDtypeStruct((B, 1), jnp.float32),
        ),
        # Gridless: every (small) array is a single whole-array VMEM block.
        # Footprint ~2.2 MiB (bf16 weights); request a modest limit with headroom.
        compiler_params=pltpu.CompilerParams(vmem_limit_bytes=8 << 20),
    )(
        audio_p, mean_hidden.astype(jnp.float32), labels2d,
        params["w1p"], params["b1"], params["w2"], params["b2"],
        params["w3"], params["b3"], params["w4"], params["b4"],
        params["pool_w"], params["pool_b"], params["wt"], params["bt"],
        params["wr_a"], params["wr_t"], params["br"],
    )
    return loss[0, 0], logits


# ----------------- deterministic parameter initialization --------------------
def init_params(key):
    def lin(k, fan_in, fan_out):
        kw, kb = jax.random.split(k)
        s = 1.0 / jnp.sqrt(fan_in)
        w = jax.random.uniform(kw, (fan_in, fan_out), jnp.float32, -s, s)
        b = jax.random.uniform(kb, (1, fan_out), jnp.float32, -s, s)
        return w, b

    keys = jax.random.split(key, 9)
    w1, b1 = lin(keys[0], 88, 256)      # DNNAudio.layer1
    w2, b2 = lin(keys[1], 256, 256)     # DNNAudio.layer2
    w3, b3 = lin(keys[2], 256, 256)     # DNNAudio.layer3
    w4, b4 = lin(keys[3], 256, 256)     # DNNAudio.layer4
    wt, bt = lin(keys[4], 768, 256)     # text_emb
    wr, br = lin(keys[5], 512, 1)       # regress
    pool_w, pool_b = lin(keys[6], 768, 768)   # surrogate-BERT pooler dense

    bf16 = jnp.bfloat16
    return {
        # matmul weights -> bf16 (halves weight DMA); w1 padded 88 -> 128 rows.
        "w1p": jnp.pad(w1, ((0, 128 - 88), (0, 0))).astype(bf16),   # (128, 256)
        "w2": w2.astype(bf16), "w3": w3.astype(bf16), "w4": w4.astype(bf16),
        "wt": wt.astype(bf16),
        "pool_w": pool_w.astype(bf16),
        # biases + tiny head weights stay f32 (VPU epilogue; v5e-friendly).
        "b1": b1, "b2": b2, "b3": b3, "b4": b4, "bt": bt, "pool_b": pool_b,
        "wr_a": wr[:256, 0].reshape(1, 256),   # regress weight, audio half
        "wr_t": wr[256:, 0].reshape(1, 256),   # regress weight, text half
        "br": br,                              # (1, 1)
        # surrogate-BERT embedding tables (gather stays in plain JAX).
        "emb_tok": jax.random.normal(keys[7], (1000, 768), jnp.float32) * 0.02,
        "emb_seg": jax.random.normal(keys[8], (2, 768), jnp.float32) * 0.02,
    }


# TODO(synk): the full pretrained 'bert-base-uncased' encoder has no clean
# in-script Pallas equivalent; this deterministic surrogate (embedding lookup +
# masked mean) stands in for it. Its pooler dense + tanh IS fused into the
# Pallas kernel above.
def surrogate_bert_mean_hidden(input_ids, token_type_ids, attention_mask, params):
    tok = params["emb_tok"][input_ids]                      # (B, S, 768)
    seg = params["emb_seg"][token_type_ids]                 # (B, S, 768)
    hidden = tok + seg
    mask = attention_mask[..., None].astype(jnp.float32)    # (B, S, 1)
    return jnp.sum(hidden * mask, axis=1) / jnp.maximum(jnp.sum(mask, axis=1), 1.0)


# --------------------------------- main --------------------------------------
if __name__ == "__main__":
    key = jax.random.PRNGKey(0)
    B, S = 2, 8

    params = init_params(key)

    k1, k2, k3 = jax.random.split(jax.random.fold_in(key, 7), 3)
    input_ids = jax.random.randint(k1, (B, S), 0, 1000, dtype=jnp.int32)
    token_type_ids = jnp.zeros((B, S), dtype=jnp.int32)
    attention_mask = jnp.ones((B, S), dtype=jnp.int32)
    audio_features = jax.random.normal(k2, (B, 88), jnp.float32)
    labels = jax.random.normal(k3, (B,), jnp.float32)

    mean_hidden = surrogate_bert_mean_hidden(
        input_ids, token_type_ids, attention_mask, params)

    loss, logits = joint_ta_multi_forward(audio_features, mean_hidden, labels, params)
    jax.block_until_ready((loss, logits))

    # ---- pure-JAX f32 reference (same bf16-quantized weights, f32 activations) ----
    def ref_forward(a, mh, lbl, p):
        f32 = jnp.float32
        a_p = jnp.pad(a, ((0, 0), (0, 128 - a.shape[1])))
        def d(x, w_bf16, b):
            return x @ w_bf16.astype(f32) + b
        h = jnp.maximum(d(a_p, p["w1p"], p["b1"]), 0)
        h = jnp.maximum(d(h, p["w2"], p["b2"]), 0)
        h = jnp.maximum(d(h, p["w3"], p["b3"]), 0)
        ar = d(h, p["w4"], p["b4"])
        pooled = jnp.tanh(d(mh, p["pool_w"], p["pool_b"]))
        tr = d(pooled, p["wt"], p["bt"])
        lg = (jnp.sum(ar * p["wr_a"], axis=1, keepdims=True)
              + jnp.sum(tr * p["wr_t"], axis=1, keepdims=True) + p["br"])
        return jnp.mean((lg.reshape(-1) - lbl.reshape(-1)) ** 2), lg

    ref_loss, ref_logits = ref_forward(audio_features, mean_hidden, labels, params)
    # Kernel casts activations to bf16 at MXU inputs -> small relative error.
    assert jnp.allclose(logits, ref_logits, atol=2e-2, rtol=2e-2)
    assert jnp.allclose(loss, ref_loss, atol=2e-2, rtol=2e-2)

    print("KERNEL_OK")
</pallas_src>

<mosaic_0001>
module attributes {stable_mosaic.version = 11 : i64} {
  func.func @joint_ta_kernel(%arg0: memref<2x128xf32, #tpu.memory_space<vmem>>, %arg1: memref<2x768xf32, #tpu.memory_space<vmem>>, %arg2: memref<2x1xf32, #tpu.memory_space<vmem>>, %arg3: memref<128x256xbf16, #tpu.memory_space<vmem>>, %arg4: memref<1x256xf32, #tpu.memory_space<vmem>>, %arg5: memref<256x256xbf16, #tpu.memory_space<vmem>>, %arg6: memref<1x256xf32, #tpu.memory_space<vmem>>, %arg7: memref<256x256xbf16, #tpu.memory_space<vmem>>, %arg8: memref<1x256xf32, #tpu.memory_space<vmem>>, %arg9: memref<256x256xbf16, #tpu.memory_space<vmem>>, %arg10: memref<1x256xf32, #tpu.memory_space<vmem>>, %arg11: memref<768x768xbf16, #tpu.memory_space<vmem>>, %arg12: memref<1x768xf32, #tpu.memory_space<vmem>>, %arg13: memref<768x256xbf16, #tpu.memory_space<vmem>>, %arg14: memref<1x256xf32, #tpu.memory_space<vmem>>, %arg15: memref<1x256xf32, #tpu.memory_space<vmem>>, %arg16: memref<1x256xf32, #tpu.memory_space<vmem>>, %arg17: memref<1x1xf32, #tpu.memory_space<vmem>>, %arg18: memref<1x1xf32, #tpu.memory_space<vmem>>, %arg19: memref<2x1xf32, #tpu.memory_space<vmem>>) attributes {dimension_semantics = [], scalar_prefetch = 0 : i64, scratch_operands = 0 : i64, tpu.core_type = #tpu.core_type<tc>} {
    %c0 = arith.constant 0 : index
    %c0_0 = arith.constant 0 : index
    %0 = vector.load %arg0[%c0, %c0_0] : memref<2x128xf32, #tpu.memory_space<vmem>>, vector<2x128xf32>
    %1 = arith.truncf %0 : vector<2x128xf32> to vector<2x128xbf16>
    %c0_1 = arith.constant 0 : index
    %c0_2 = arith.constant 0 : index
    %2 = vector.load %arg3[%c0_1, %c0_2] : memref<128x256xbf16, #tpu.memory_space<vmem>>, vector<128x256xbf16>
    %cst = arith.constant dense<0.000000e+00> : vector<2x256xf32>
    %3 = tpu.matmul %1, %2, %cst {dimension_numbers = #tpu.dot_dimension_numbers<[1], [0], [0], [1], [0, 0, 1, 1], [], []>} : vector<2x128xbf16>, vector<128x256xbf16>, vector<2x256xf32> -> vector<2x256xf32>
    %c0_3 = arith.constant 0 : index
    %c0_4 = arith.constant 0 : index
    %4 = vector.load %arg4[%c0_3, %c0_4] : memref<1x256xf32, #tpu.memory_space<vmem>>, vector<1x256xf32>
    %5 = vector.broadcast %4 : vector<1x256xf32> to vector<2x256xf32>
    %6 = arith.addf %3, %5 : vector<2x256xf32>
    %cst_5 = arith.constant 0.000000e+00 : f32
    %7 = vector.broadcast %cst_5 : f32 to vector<2x256xf32>
    %8 = arith.maximumf %6, %7 : vector<2x256xf32>
    %9 = arith.truncf %8 : vector<2x256xf32> to vector<2x256xbf16>
    %c0_6 = arith.constant 0 : index
    %c0_7 = arith.constant 0 : index
    %10 = vector.load %arg5[%c0_6, %c0_7] : memref<256x256xbf16, #tpu.memory_space<vmem>>, vector<256x256xbf16>
    %cst_8 = arith.constant dense<0.000000e+00> : vector<2x256xf32>
    %11 = tpu.matmul %9, %10, %cst_8 {dimension_numbers = #tpu.dot_dimension_numbers<[1], [0], [0], [1], [0, 0, 1, 1], [], []>} : vector<2x256xbf16>, vector<256x256xbf16>, vector<2x256xf32> -> vector<2x256xf32>
    %c0_9 = arith.constant 0 : index
    %c0_10 = arith.constant 0 : index
    %12 = vector.load %arg6[%c0_9, %c0_10] : memref<1x256xf32, #tpu.memory_space<vmem>>, vector<1x256xf32>
    %13 = vector.broadcast %12 : vector<1x256xf32> to vector<2x256xf32>
    %14 = arith.addf %11, %13 : vector<2x256xf32>
    %cst_11 = arith.constant 0.000000e+00 : f32
    %15 = vector.broadcast %cst_11 : f32 to vector<2x256xf32>
    %16 = arith.maximumf %14, %15 : vector<2x256xf32>
    %17 = arith.truncf %16 : vector<2x256xf32> to vector<2x256xbf16>
    %c0_12 = arith.constant 0 : index
    %c0_13 = arith.constant 0 : index
    %18 = vector.load %arg7[%c0_12, %c0_13] : memref<256x256xbf16, #tpu.memory_space<vmem>>, vector<256x256xbf16>
    %cst_14 = arith.constant dense<0.000000e+00> : vector<2x256xf32>
    %19 = tpu.matmul %17, %18, %cst_14 {dimension_numbers = #tpu.dot_dimension_numbers<[1], [0], [0], [1], [0, 0, 1, 1], [], []>} : vector<2x256xbf16>, vector<256x256xbf16>, vector<2x256xf32> -> vector<2x256xf32>
    %c0_15 = arith.constant 0 : index
    %c0_16 = arith.constant 0 : index
    %20 = vector.load %arg8[%c0_15, %c0_16] : memref<1x256xf32, #tpu.memory_space<vmem>>, vector<1x256xf32>
    %21 = vector.broadcast %20 : vector<1x256xf32> to vector<2x256xf32>
    %22 = arith.addf %19, %21 : vector<2x256xf32>
    %cst_17 = arith.constant 0.000000e+00 : f32
    %23 = vector.broadcast %cst_17 : f32 to vector<2x256xf32>
    %24 = arith.maximumf %22, %23 : vector<2x256xf32>
    %25 = arith.truncf %24 : vector<2x256xf32> to vector<2x256xbf16>
    %c0_18 = arith.constant 0 : index
    %c0_19 = arith.constant 0 : index
    %26 = vector.load %arg9[%c0_18, %c0_19] : memref<256x256xbf16, #tpu.memory_space<vmem>>, vector<256x256xbf16>
    %cst_20 = arith.constant dense<0.000000e+00> : vector<2x256xf32>
    %27 = tpu.matmul %25, %26, %cst_20 {dimension_numbers = #tpu.dot_dimension_numbers<[1], [0], [0], [1], [0, 0, 1, 1], [], []>} : vector<2x256xbf16>, vector<256x256xbf16>, vector<2x256xf32> -> vector<2x256xf32>
    %c0_21 = arith.constant 0 : index
    %c0_22 = arith.constant 0 : index
    %28 = vector.load %arg10[%c0_21, %c0_22] : memref<1x256xf32, #tpu.memory_space<vmem>>, vector<1x256xf32>
    %29 = vector.broadcast %28 : vector<1x256xf32> to vector<2x256xf32>
    %30 = arith.addf %27, %29 : vector<2x256xf32>
    %c0_23 = arith.constant 0 : index
    %c0_24 = arith.constant 0 : index
    %31 = vector.load %arg1[%c0_23, %c0_24] : memref<2x768xf32, #tpu.memory_space<vmem>>, vector<2x768xf32>
    %32 = arith.truncf %31 : vector<2x768xf32> to vector<2x768xbf16>
    %c0_25 = arith.constant 0 : index
    %c0_26 = arith.constant 0 : index
    %33 = vector.load %arg11[%c0_25, %c0_26] : memref<768x768xbf16, #tpu.memory_space<vmem>>, vector<768x768xbf16>
    %cst_27 = arith.constant dense<0.000000e+00> : vector<2x768xf32>
    %34 = tpu.matmul %32, %33, %cst_27 {dimension_numbers = #tpu.dot_dimension_numbers<[1], [0], [0], [1], [0, 0, 1, 1], [], []>} : vector<2x768xbf16>, vector<768x768xbf16>, vector<2x768xf32> -> vector<2x768xf32>
    %c0_28 = arith.constant 0 : index
    %c0_29 = arith.constant 0 : index
    %35 = vector.load %arg12[%c0_28, %c0_29] : memref<1x768xf32, #tpu.memory_space<vmem>>, vector<1x768xf32>
    %36 = vector.broadcast %35 : vector<1x768xf32> to vector<2x768xf32>
    %37 = arith.addf %34, %36 : vector<2x768xf32>
    %38 = math.tanh %37 : vector<2x768xf32>
    %39 = arith.truncf %38 : vector<2x768xf32> to vector<2x768xbf16>
    %c0_30 = arith.constant 0 : index
    %c0_31 = arith.constant 0 : index
    %40 = vector.load %arg13[%c0_30, %c0_31] : memref<768x256xbf16, #tpu.memory_space<vmem>>, vector<768x256xbf16>
    %cst_32 = arith.constant dense<0.000000e+00> : vector<2x256xf32>
    %41 = tpu.matmul %39, %40, %cst_32 {dimension_numbers = #tpu.dot_dimension_numbers<[1], [0], [0], [1], [0, 0, 1, 1], [], []>} : vector<2x768xbf16>, vector<768x256xbf16>, vector<2x256xf32> -> vector<2x256xf32>
    %c0_33 = arith.constant 0 : index
    %c0_34 = arith.constant 0 : index
    %42 = vector.load %arg14[%c0_33, %c0_34] : memref<1x256xf32, #tpu.memory_space<vmem>>, vector<1x256xf32>
    %43 = vector.broadcast %42 : vector<1x256xf32> to vector<2x256xf32>
    %44 = arith.addf %41, %43 : vector<2x256xf32>
    %c0_35 = arith.constant 0 : index
    %c0_36 = arith.constant 0 : index
    %45 = vector.load %arg15[%c0_35, %c0_36] : memref<1x256xf32, #tpu.memory_space<vmem>>, vector<1x256xf32>
    %46 = vector.broadcast %45 : vector<1x256xf32> to vector<2x256xf32>
    %47 = arith.mulf %30, %46 : vector<2x256xf32>
    %cst_37 = arith.constant dense<0.000000e+00> : vector<2xf32>
    %48 = vector.multi_reduction <add>, %47, %cst_37 [1] : vector<2x256xf32> to vector<2xf32>
    %49 = vector.shape_cast %48 : vector<2xf32> to vector<2x1xf32>
    %c0_38 = arith.constant 0 : index
    %c0_39 = arith.constant 0 : index
    %50 = vector.load %arg16[%c0_38, %c0_39] : memref<1x256xf32, #tpu.memory_space<vmem>>, vector<1x256xf32>
    %51 = vector.broadcast %50 : vector<1x256xf32> to vector<2x256xf32>
    %52 = arith.mulf %44, %51 : vector<2x256xf32>
    %cst_40 = arith.constant dense<0.000000e+00> : vector<2xf32>
    %53 = vector.multi_reduction <add>, %52, %cst_40 [1] : vector<2x256xf32> to vector<2xf32>
    %54 = vector.shape_cast %53 : vector<2xf32> to vector<2x1xf32>
    %55 = arith.addf %49, %54 : vector<2x1xf32>
    %c0_41 = arith.constant 0 : index
    %c0_42 = arith.constant 0 : index
    %56 = vector.load %arg17[%c0_41, %c0_42] : memref<1x1xf32, #tpu.memory_space<vmem>>, vector<1x1xf32>
    %57 = vector.broadcast %56 : vector<1x1xf32> to vector<2x1xf32>
    %58 = arith.addf %55, %57 : vector<2x1xf32>
    %c0_43 = arith.constant 0 : index
    %c0_44 = arith.constant 0 : index
    %59 = vector.load %arg19[%c0_43, %c0_44] : memref<2x1xf32, #tpu.memory_space<vmem>>, vector<2x1xf32>
    tpu.vector_store %arg19[%c0_43, %c0_44], %58 {strides = array<i32>} : memref<2x1xf32, #tpu.memory_space<vmem>>, vector<2x1xf32>,
    %c0_45 = arith.constant 0 : index
    %c0_46 = arith.constant 0 : index
    %60 = vector.load %arg2[%c0_45, %c0_46] : memref<2x1xf32, #tpu.memory_space<vmem>>, vector<2x1xf32>
    %61 = arith.subf %58, %60 : vector<2x1xf32>
    %62 = arith.mulf %61, %61 : vector<2x1xf32>
    %63 = vector.shape_cast %62 : vector<2x1xf32> to vector<1x2x1xf32>
    %cst_47 = arith.constant dense<0.000000e+00> : vector<1xf32>
    %64 = vector.multi_reduction <add>, %63, %cst_47 [1, 2] : vector<1x2x1xf32> to vector<1xf32>
    %65 = vector.shape_cast %64 : vector<1xf32> to vector<1x1x1xf32>
    %66 = vector.extract %65[0, 0, 0] : f32 from vector<1x1x1xf32>
    %67 = vector.broadcast %66 : f32 to vector<1x1xf32>
    %cst_48 = arith.constant 2.000000e+00 : f32
    %68 = vector.broadcast %cst_48 : f32 to vector<1x1xf32>
    %69 = arith.divf %67, %68 : vector<1x1xf32>
    %c0_49 = arith.constant 0 : index
    %c0_50 = arith.constant 0 : index
    %70 = vector.load %arg18[%c0_49, %c0_50] : memref<1x1xf32, #tpu.memory_space<vmem>>, vector<1x1xf32>
    tpu.vector_store %arg18[%c0_49, %c0_50], %69 {strides = array<i32>} : memref<1x1xf32, #tpu.memory_space<vmem>>, vector<1x1xf32>,
    return
  }
}

</mosaic_0001>

<bundles_post_ra>
// kernel: tpu_custom_call.1
= control target key start
LH: loop header
LB: loop body
LE: loop exit
PB: predicated region body
PF: predicated region fallthrough
CT: control target
= control target key end

     0   :  { %s6317_s0 = inlined_call_operand.hbm [shape: f32[2,128], index: 0, kind: input, shape index: {}]   ;;  %s6318_s1 = inlined_call_operand.hbm [shape: f32[2,768], index: 1, kind: input, shape index: {}]   ;;  %s6319_s2 = inlined_call_operand.vmem [shape: f32[2,1], index: 2, kind: input, shape index: {}]   ;;  %s6320_s3 = inlined_call_operand.hbm [shape: bf16[128,256], index: 3, kind: input, shape index: {}]   ;;  %s6321_s4 = inlined_call_operand.hbm [shape: f32[1,256], index: 4, kind: input, shape index: {}]   ;;  %s6322_s5 = inlined_call_operand.hbm [shape: bf16[256,256], index: 5, kind: input, shape index: {}]   ;;  %s6323_s6 = inlined_call_operand.hbm [shape: f32[1,256], index: 6, kind: input, shape index: {}]   ;;  %s6324_s7 = inlined_call_operand.hbm [shape: bf16[256,256], index: 7, kind: input, shape index: {}]   ;;  %s6325_s8 = inlined_call_operand.hbm [shape: f32[1,256], index: 8, kind: input, shape index: {}]   ;;  %s6326_s9 = inlined_call_operand.hbm [shape: bf16[256,256], index: 9, kind: input, shape index: {}]   ;;  %s6327_s10 = inlined_call_operand.hbm [shape: f32[1,256], index: 10, kind: input, shape index: {}]   ;;  %s6328_s11 = inlined_call_operand.hbm [shape: bf16[768,768], index: 11, kind: input, shape index: {}]   ;;  %s6329_s12 = inlined_call_operand.hbm [shape: f32[1,768], index: 12, kind: input, shape index: {}]   ;;  %s6330_s13 = inlined_call_operand.hbm [shape: bf16[768,256], index: 13, kind: input, shape index: {}]   ;;  %s6331_s14 = inlined_call_operand.hbm [shape: f32[1,256], index: 14, kind: input, shape index: {}]   ;;  %s6332_s15 = inlined_call_operand.hbm [shape: f32[1,256], index: 15, kind: input, shape index: {}]   ;;  %s6333_s16 = inlined_call_operand.hbm [shape: f32[1,256], index: 16, kind: input, shape index: {}]   ;;  %s6334_s17 = inlined_call_operand.<no memory space> [shape: f32[1,1], index: 17, kind: input, shape index: {}]   ;;  %s6335_s18 = inlined_call_operand.hbm [shape: f32[1,1], index: 18, kind: output, shape index: {0}]   ;;  %s6336_s19 = inlined_call_operand.vmem [shape: f32[2,1], index: 19, kind: output, shape index: {1}]  }
   0x1   :  { %6340 = sst [smem:[#allocation40_spill]] %s6317_s0  ;;  %v25_v0 = vstv %s6334_s17 }
   0x2   :  { %6341 = sst [smem:[#allocation41_spill]] %s6318_s1  ;;  %26 = vst [vmem:[#allocation2] sm:$0x1] %v25_v0 }
   0x3   :  { %6342 = sst [smem:[#allocation42_spill]] %s6319_s2 }
   0x4   :  { %6343 = sst [smem:[#allocation43_spill]] %s6320_s3 }
   0x5   :  { %27 = vsyncpa [#allocation4], 0 }
   0x6   :  { %28 = vsyncpa [#allocation7], 0 }
   0x7   :  { %29 = vsyncpa [#allocation10], 0 }
   0x8   :  { %30 = vsyncpa [#allocation13], 0 }
   0x9   :  { %31 = vsyncpa [#allocation16], 0 }
   0xa   :  { %32 = vsyncpa [#allocation19], 0 }
   0xb   :  { %33 = vsyncpa [#allocation22], 0 }
   0xc   :  { %34 = vsyncpa [#allocation25], 0 }
   0xd   :  { %35 = vsyncpa [#allocation28], 0 }
   0xe   :  { %36 = vsyncpa [#allocation5], 0  ;;  %s5862_s20 = smov [#allocation6]   ;;  %s5863_s1 = smov [#allocation9]  }
   0xf   :  { %s53_s21 = sshll.u32 %s5862_s20, 4  ;;  %s77_s22 = sshll.u32 %s5863_s1, 4  ;;  %s54_s21 = int_to_ptr.vmem [resolvable:$true] %s53_s21  ;;  %s78_s22 = int_to_ptr.vmem [resolvable:$true] %s77_s22 }
  0x10   :  { %s6344_s17 = sld [smem:[#allocation41_spill]] }
  0x16   :  { %s5468_s24 = scalar_lea.hbm %s6344_s17, 192 }
  0x17   :  { %p5469_p0 = scmp.ne.s32.totalorder %s6344_s17, %s5468_s24  ;;  %p5472_p1 = scmp.lt.u32.totalorder %s5468_s24, %s6344_s17 }
  0x19   :  { %p5474_p2 = pnand %p5472_p1, %p5469_p0 }
  0x1b   :  { %5477 = shalt.err (!%p5474_p2)
}
  0x1c   :  { %s5478_s28 = scalar_lea.vmem %s54_s21, 192  ;;  %p5483_p4 = scmp.lt.s32.totalorder %s54_s21, %s54_s21 }
  0x1d   :  { %p5479_p3 = scmp.ne.s32.totalorder %s54_s21, %s5478_s28  ;;  %p5484_p5 = scmp.lt.s32.totalorder %s5478_s28, %s5478_s28 }
  0x1f   :  { %p5485_p6 = por %p5484_p5, %p5483_p4 }
  0x21   :  { %p5486_p7 = pnand %p5485_p6, %p5479_p3 }
  0x23   :  { %5489 = shalt.err (!%p5486_p7)
}
  0x24   :  { %56 = dma.hbm_to_vmem [thread:$0]  %s6344_s17, 192, %s54_s21, [#allocation7]  }
  0x25   :  { %s5490_s1 = scalar_lea.hbm %s6321_s4, 32 }
  0x26   :  { %p5491_p8 = scmp.ne.s32.totalorder %s6321_s4, %s5490_s1  ;;  %p5494_p9 = scmp.lt.u32.totalorder %s5490_s1, %s6321_s4 }
  0x28   :  { %p5496_p10 = pnand %p5494_p9, %p5491_p8 }
  0x2a   :  { %5499 = shalt.err (!%p5496_p10)
}
  0x2b   :  { %s5500_s3 = scalar_lea.vmem %s78_s22, 32  ;;  %p5505_p12 = scmp.lt.s32.totalorder %s78_s22, %s78_s22 }
  0x2c   :  { %p5501_p11 = scmp.ne.s32.totalorder %s78_s22, %s5500_s3  ;;  %p5506_p13 = scmp.lt.s32.totalorder %s5500_s3, %s5500_s3 }
  0x2e   :  { %p5507_p0 = por %p5506_p13, %p5505_p12 }
  0x30   :  { %p5508_p1 = pnand %p5507_p0, %p5501_p11 }
  0x32   :  { %5511 = shalt.err (!%p5508_p1)
}
  0x33   :  { %80 = dma.hbm_to_vmem [thread:$0]  %s6321_s4, 32, %s78_s22, [#allocation10]  }
  0x34   :  { %s5864_s26 = smov [#allocation12]   ;;  %s5865_s28 = smov [#allocation15]  }
  0x35   :  { %s99_s27 = sshll.u32 %s5864_s26, 4  ;;  %s121_s29 = sshll.u32 %s5865_s28, 4  ;;  %s100_s27 = int_to_ptr.vmem [resolvable:$true] %s99_s27  ;;  %s122_s29 = int_to_ptr.vmem [resolvable:$true] %s121_s29 }
  0x36   :  { %s5512_s20 = scalar_lea.hbm %s6323_s6, 32 }
  0x37   :  { %p5513_p2 = scmp.ne.s32.totalorder %s6323_s6, %s5512_s20  ;;  %p5516_p3 = scmp.lt.u32.totalorder %s5512_s20, %s6323_s6 }
  0x39   :  { %p5518_p4 = pnand %p5516_p3, %p5513_p2 }
  0x3b   :  { %5521 = shalt.err (!%p5518_p4)
}
  0x3c   :  { %s5522_s4 = scalar_lea.vmem %s100_s27, 32  ;;  %p5527_p6 = scmp.lt.s32.totalorder %s100_s27, %s100_s27 }
  0x3d   :  { %p5523_p5 = scmp.ne.s32.totalorder %s100_s27, %s5522_s4  ;;  %p5528_p7 = scmp.lt.s32.totalorder %s5522_s4, %s5522_s4 }
  0x3f   :  { %p5529_p8 = por %p5528_p7, %p5527_p6 }
  0x41   :  { %p5530_p9 = pnand %p5529_p8, %p5523_p5 }
  0x43   :  { %5533 = shalt.err (!%p5530_p9)
}
  0x44   :  { %102 = dma.hbm_to_vmem [thread:$0]  %s6323_s6, 32, %s100_s27, [#allocation13]  }
  0x45   :  { %s5534_s17 = scalar_lea.hbm %s6325_s8, 32 }
  0x46   :  { %p5535_p10 = scmp.ne.s32.totalorder %s6325_s8, %s5534_s17  ;;  %p5538_p11 = scmp.lt.u32.totalorder %s5534_s17, %s6325_s8 }
  0x48   :  { %p5540_p12 = pnand %p5538_p11, %p5535_p10 }
  0x4a   :  { %5543 = shalt.err (!%p5540_p12)
}
  0x4b   :  { %s5544_s20 = scalar_lea.vmem %s122_s29, 32  ;;  %p5549_p0 = scmp.lt.s32.totalorder %s122_s29, %s122_s29 }
  0x4c   :  { %p5545_p13 = scmp.ne.s32.totalorder %s122_s29, %s5544_s20  ;;  %p5550_p1 = scmp.lt.s32.totalorder %s5544_s20, %s5544_s20 }
  0x4e   :  { %p5551_p2 = por %p5550_p1, %p5549_p0 }
  0x50   :  { %p5552_p3 = pnand %p5551_p2, %p5545_p13 }
  0x52   :  { %5555 = shalt.err (!%p5552_p3)
}
  0x53   :  { %124 = dma.hbm_to_vmem [thread:$0]  %s6325_s8, 32, %s122_s29, [#allocation16]  }
  0x54   :  { %s5866_s1 = smov [#allocation18]   ;;  %s5867_s23 = smov [#allocation21]  }
  0x55   :  { %s143_s2 = sshll.u32 %s5866_s1, 4  ;;  %s165_s24 = sshll.u32 %s5867_s23, 4  ;;  %s144_s2 = int_to_ptr.vmem [resolvable:$true] %s143_s2  ;;  %s166_s24 = int_to_ptr.vmem [resolvable:$true] %s165_s24 }
  0x56   :  { %s5556_s25 = scalar_lea.hbm %s6327_s10, 32 }
  0x57   :  { %p5557_p4 = scmp.ne.s32.totalorder %s6327_s10, %s5556_s25  ;;  %p5560_p5 = scmp.lt.u32.totalorder %s5556_s25, %s6327_s10 }
  0x59   :  { %p5562_p6 = pnand %p5560_p5, %p5557_p4 }
  0x5b   :  { %5565 = shalt.err (!%p5562_p6)
}
  0x5c   :  { %s5566_s8 = scalar_lea.vmem %s144_s2, 32  ;;  %p5571_p8 = scmp.lt.s32.totalorder %s144_s2, %s144_s2 }
  0x5d   :  { %p5567_p7 = scmp.ne.s32.totalorder %s144_s2, %s5566_s8  ;;  %p5572_p9 = scmp.lt.s32.totalorder %s5566_s8, %s5566_s8 }
  0x5f   :  { %p5573_p10 = por %p5572_p9, %p5571_p8 }
  0x61   :  { %p5574_p11 = pnand %p5573_p10, %p5567_p7 }
  0x63   :  { %5577 = shalt.err (!%p5574_p11)
}
  0x64   :  { %146 = dma.hbm_to_vmem [thread:$0]  %s6327_s10, 32, %s144_s2, [#allocation19]  }
  0x65   :  { %s5578_s20 = scalar_lea.hbm %s6329_s12, 96 }
  0x66   :  { %p5579_p12 = scmp.ne.s32.totalorder %s6329_s12, %s5578_s20  ;;  %p5582_p13 = scmp.lt.u32.totalorder %s5578_s20, %s6329_s12 }
  0x68   :  { %p5584_p0 = pnand %p5582_p13, %p5579_p12 }
  0x6a   :  { %5587 = shalt.err (!%p5584_p0)
}
  0x6b   :  { %s5588_s4 = scalar_lea.vmem %s166_s24, 96  ;;  %p5593_p2 = scmp.lt.s32.totalorder %s166_s24, %s166_s24 }
  0x6c   :  { %p5589_p1 = scmp.ne.s32.totalorder %s166_s24, %s5588_s4  ;;  %p5594_p3 = scmp.lt.s32.totalorder %s5588_s4, %s5588_s4 }
  0x6e   :  { %p5595_p4 = por %p5594_p3, %p5593_p2 }
  0x70   :  { %p5596_p5 = pnand %p5595_p4, %p5589_p1 }
  0x72   :  { %5599 = shalt.err (!%p5596_p5)
}
  0x73   :  { %168 = dma.hbm_to_vmem [thread:$0]  %s6329_s12, 96, %s166_s24, [#allocation22]  }
  0x74   :  { %s5868_s22 = smov [#allocation24]   ;;  %s5869_s3 = smov [#allocation3]  }
  0x75   :  { %s187_s25 = sshll.u32 %s5868_s22, 4  ;;  %s43_s21 = sshll.u32 %s5869_s3, 4  ;;  %s188_s25 = int_to_ptr.vmem [resolvable:$true] %s187_s25  ;;  %s44_s21 = int_to_ptr.vmem [resolvable:$true] %s43_s21 }
  0x76   :  { %s5600_s8 = scalar_lea.hbm %s6331_s14, 32 }
  0x77   :  { %p5601_p6 = scmp.ne.s32.totalorder %s6331_s14, %s5600_s8  ;;  %p5604_p7 = scmp.lt.u32.totalorder %s5600_s8, %s6331_s14 }
  0x79   :  { %p5606_p8 = pnand %p5604_p7, %p5601_p6 }
  0x7b   :  { %5609 = shalt.err (!%p5606_p8)
}
  0x7c   :  { %s5610_s12 = scalar_lea.vmem %s188_s25, 32  ;;  %p5615_p10 = scmp.lt.s32.totalorder %s188_s25, %s188_s25 }
  0x7d   :  { %p5611_p9 = scmp.ne.s32.totalorder %s188_s25, %s5610_s12  ;;  %p5616_p11 = scmp.lt.s32.totalorder %s5610_s12, %s5610_s12 }
  0x7f   :  { %p5617_p12 = por %p5616_p11, %p5615_p10 }
  0x81   :  { %p5618_p13 = pnand %p5617_p12, %p5611_p9 }
  0x83   :  { %5621 = shalt.err (!%p5618_p13)
}
  0x84   :  { %190 = dma.hbm_to_vmem [thread:$0]  %s6331_s14, 32, %s188_s25, [#allocation25]  }
  0x85   :  { %s6345_s1 = sld [smem:[#allocation40_spill]] }
  0x8b   :  { %s5622_s23 = scalar_lea.hbm %s6345_s1, 32 }
  0x8c   :  { %p5623_p0 = scmp.ne.s32.totalorder %s6345_s1, %s5622_s23  ;;  %p5626_p1 = scmp.lt.u32.totalorder %s5622_s23, %s6345_s1 }
  0x8e   :  { %p5628_p2 = pnand %p5626_p1, %p5623_p0 }
  0x90   :  { %5631 = shalt.err (!%p5628_p2)
}
  0x91   :  { %s5632_s3 = scalar_lea.vmem %s44_s21, 32  ;;  %p5637_p4 = scmp.lt.s32.totalorder %s44_s21, %s44_s21 }
  0x92   :  { %p5633_p3 = scmp.ne.s32.totalorder %s44_s21, %s5632_s3  ;;  %p5638_p5 = scmp.lt.s32.totalorder %s5632_s3, %s5632_s3 }
  0x94   :  { %p5639_p6 = por %p5638_p5, %p5637_p4 }
  0x96   :  { %p5640_p7 = pnand %p5639_p6, %p5633_p3 }
  0x98   :  { %5643 = shalt.err (!%p5640_p7)
}
  0x99   :  { %46 = dma.hbm_to_vmem [thread:$0]  %s6345_s1, 32, %s44_s21, [#allocation4]  }
  0x9a   :  { %s5870_s17 = smov [#allocation8]   ;;  %s6346_s28 = sld [smem:[#allocation43_spill]] }
  0x9b   :  { %s64_s26 = sshll.u32 %s5870_s17, 4  ;;  %s65_s26 = int_to_ptr.vmem [resolvable:$true] %s64_s26 }
  0xa0   :  { %s5644_s0 = scalar_lea.hbm %s6346_s28, 2048 }
  0xa1   :  { %p5645_p8 = scmp.ne.s32.totalorder %s6346_s28, %s5644_s0  ;;  %p5648_p9 = scmp.lt.u32.totalorder %s5644_s0, %s6346_s28 }
  0xa3   :  { %p5650_p10 = pnand %p5648_p9, %p5645_p8 }
  0xa5   :  { %5653 = shalt.err (!%p5650_p10)
}
  0xa6   :  { %s5654_s6 = scalar_lea.vmem %s65_s26, 2048  ;;  %p5659_p12 = scmp.lt.s32.totalorder %s65_s26, %s65_s26 }
  0xa7   :  { %p5655_p11 = scmp.ne.s32.totalorder %s65_s26, %s5654_s6  ;;  %p5660_p13 = scmp.lt.s32.totalorder %s5654_s6, %s5654_s6 }
  0xa9   :  { %p5661_p0 = por %p5660_p13, %p5659_p12 }
  0xab   :  { %p5662_p1 = pnand %p5661_p0, %p5655_p11 }
  0xad   :  { %5665 = shalt.err (!%p5662_p1)
}
  0xae   :  { %s5871_s21 = smov 128   ;;  %s5872_s27 = smov 8  }
  0xaf   :  { %70 = dma.hbm_to_vmem [thread:$0]  %s6346_s28, 2048, %s65_s26, [#allocation7], %s5871_s21, %s5871_s21, %s5872_s27  }
  0xb0   :  { %s5873_s4 = smov [#allocation11]   ;;  %s5874_s2 = smov [#allocation14]  }
  0xb1   :  { %s86_s10 = sshll.u32 %s5873_s4, 4  ;;  %s108_s22 = sshll.u32 %s5874_s2, 4  ;;  %s87_s10 = int_to_ptr.vmem [resolvable:$true] %s86_s10  ;;  %s109_s22 = int_to_ptr.vmem [resolvable:$true] %s108_s22 }
  0xb2   :  { %s5666_s25 = scalar_lea.hbm %s6322_s5, 4096 }
  0xb3   :  { %p5667_p2 = scmp.ne.s32.totalorder %s6322_s5, %s5666_s25  ;;  %p5670_p3 = scmp.lt.u32.totalorder %s5666_s25, %s6322_s5 }
  0xb5   :  { %p5672_p4 = pnand %p5670_p3, %p5667_p2 }
  0xb7   :  { %5675 = shalt.err (!%p5672_p4)
}
  0xb8   :  { %s5676_s26 = scalar_lea.vmem %s87_s10, 4096  ;;  %p5681_p6 = scmp.lt.s32.totalorder %s87_s10, %s87_s10 }
  0xb9   :  { %p5677_p5 = scmp.ne.s32.totalorder %s87_s10, %s5676_s26  ;;  %p5682_p7 = scmp.lt.s32.totalorder %s5676_s26, %s5676_s26 }
  0xbb   :  { %p5683_p8 = por %p5682_p7, %p5681_p6 }
  0xbd   :  { %p5684_p9 = pnand %p5683_p8, %p5677_p5 }
  0xbf   :  { %5687 = shalt.err (!%p5684_p9)
}
  0xc0   :  { %92 = dma.hbm_to_vmem [thread:$0]  %s6322_s5, 4096, %s87_s10, [#allocation10], %s5871_s21, %s5871_s21, %s5872_s27  }
  0xc1   :  { %s5688_s20 = scalar_lea.hbm %s6324_s7, 4096 }
  0xc2   :  { %p5689_p10 = scmp.ne.s32.totalorder %s6324_s7, %s5688_s20  ;;  %p5692_p11 = scmp.lt.u32.totalorder %s5688_s20, %s6324_s7 }
  0xc4   :  { %p5694_p12 = pnand %p5692_p11, %p5689_p10 }
  0xc6   :  { %5697 = shalt.err (!%p5694_p12)
}
  0xc7   :  { %s5698_s2 = scalar_lea.vmem %s109_s22, 4096  ;;  %p5703_p0 = scmp.lt.s32.totalorder %s109_s22, %s109_s22 }
  0xc8   :  { %p5699_p13 = scmp.ne.s32.totalorder %s109_s22, %s5698_s2  ;;  %p5704_p1 = scmp.lt.s32.totalorder %s5698_s2, %s5698_s2 }
  0xca   :  { %p5705_p2 = por %p5704_p1, %p5703_p0 }
  0xcc   :  { %p5706_p3 = pnand %p5705_p2, %p5699_p13 }
  0xce   :  { %5709 = shalt.err (!%p5706_p3)
}
  0xcf   :  { %114 = dma.hbm_to_vmem [thread:$0]  %s6324_s7, 4096, %s109_s22, [#allocation13], %s5871_s21, %s5871_s21, %s5872_s27  }
  0xd0   :  { %s5875_s3 = smov [#allocation17]   ;;  %s5876_s25 = smov [#allocation20]  }
  0xd1   :  { %s130_s14 = sshll.u32 %s5875_s3, 4  ;;  %s152_s17 = sshll.u32 %s5876_s25, 4  ;;  %s131_s14 = int_to_ptr.vmem [resolvable:$true] %s130_s14  ;;  %s153_s17 = int_to_ptr.vmem [resolvable:$true] %s152_s17 }
  0xd2   :  { %s5710_s0 = scalar_lea.hbm %s6326_s9, 4096 }
  0xd3   :  { %p5711_p4 = scmp.ne.s32.totalorder %s6326_s9, %s5710_s0  ;;  %p5714_p5 = scmp.lt.u32.totalorder %s5710_s0, %s6326_s9 }
  0xd5   :  { %p5716_p6 = pnand %p5714_p5, %p5711_p4 }
  0xd7   :  { %5719 = shalt.err (!%p5716_p6)
}
  0xd8   :  { %s5720_s7 = scalar_lea.vmem %s131_s14, 4096  ;;  %p5725_p8 = scmp.lt.s32.totalorder %s131_s14, %s131_s14 }
  0xd9   :  { %p5721_p7 = scmp.ne.s32.totalorder %s131_s14, %s5720_s7  ;;  %p5726_p9 = scmp.lt.s32.totalorder %s5720_s7, %s5720_s7 }
  0xdb   :  { %p5727_p10 = por %p5726_p9, %p5725_p8 }
  0xdd   :  { %p5728_p11 = pnand %p5727_p10, %p5721_p7 }
  0xdf   :  { %5731 = shalt.err (!%p5728_p11)
}
  0xe0   :  { %136 = dma.hbm_to_vmem [thread:$0]  %s6326_s9, 4096, %s131_s14, [#allocation16], %s5871_s21, %s5871_s21, %s5872_s27  }
  0xe1   :  { %s5732_s1 = scalar_lea.hbm %s6328_s11, 36864 }
  0xe2   :  { %p5733_p12 = scmp.ne.s32.totalorder %s6328_s11, %s5732_s1  ;;  %p5736_p13 = scmp.lt.u32.totalorder %s5732_s1, %s6328_s11 }
  0xe4   :  { %p5738_p0 = pnand %p5736_p13, %p5733_p12 }
  0xe6   :  { %5741 = shalt.err (!%p5738_p0)
}
  0xe7   :  { %s5742_s10 = scalar_lea.vmem %s153_s17, 36864  ;;  %p5747_p2 = scmp.lt.s32.totalorder %s153_s17, %s153_s17 }
  0xe8   :  { %p5743_p1 = scmp.ne.s32.totalorder %s153_s17, %s5742_s10  ;;  %p5748_p3 = scmp.lt.s32.totalorder %s5742_s10, %s5742_s10 }
  0xea   :  { %p5749_p4 = por %p5748_p3, %p5747_p2 }
  0xec   :  { %p5750_p5 = pnand %p5749_p4, %p5743_p1 }
  0xee   :  { %5753 = shalt.err (!%p5750_p5)
}
  0xef   :  { %s5877_s9 = smov 384   ;;  %s5878_s3 = smov 24  }
  0xf0   :  { %158 = dma.hbm_to_vmem [thread:$0]  %s6328_s11, 36864, %s153_s17, [#allocation19], %s5877_s9, %s5877_s9, %s5878_s3  }
  0xf1   :  { %s5879_s8 = smov [#allocation23]   ;;  %s5880_s0 = smov [#allocation26]  }
  0xf2   :  { %s174_s29 = sshll.u32 %s5879_s8, 4  ;;  %s197_s26 = sshll.u32 %s5880_s0, 4  ;;  %s175_s29 = int_to_ptr.vmem [resolvable:$true] %s174_s29  ;;  %s198_s26 = int_to_ptr.vmem [resolvable:$true] %s197_s26 }
  0xf3   :  { %s5754_s12 = scalar_lea.hbm %s6330_s13, 12288 }
  0xf4   :  { %p5755_p6 = scmp.ne.s32.totalorder %s6330_s13, %s5754_s12  ;;  %p5758_p7 = scmp.lt.u32.totalorder %s5754_s12, %s6330_s13 }
  0xf6   :  { %p5760_p8 = pnand %p5758_p7, %p5755_p6 }
  0xf8   :  { %5763 = shalt.err (!%p5760_p8)
}
  0xf9   :  { %s5764_s11 = scalar_lea.vmem %s175_s29, 12288  ;;  %p5769_p10 = scmp.lt.s32.totalorder %s175_s29, %s175_s29 }
  0xfa   :  { %p5765_p9 = scmp.ne.s32.totalorder %s175_s29, %s5764_s11  ;;  %p5770_p11 = scmp.lt.s32.totalorder %s5764_s11, %s5764_s11 }
  0xfc   :  { %p5771_p12 = por %p5770_p11, %p5769_p10 }
  0xfe   :  { %p5772_p13 = pnand %p5771_p12, %p5765_p9 }
 0x100   :  { %5775 = shalt.err (!%p5772_p13)
}
 0x101   :  { %180 = dma.hbm_to_vmem [thread:$0]  %s6330_s13, 12288, %s175_s29, [#allocation22], %s5871_s21, %s5871_s21, %s5872_s27  }
 0x102   :  { %s5776_s4 = scalar_lea.hbm %s6332_s15, 32 }
 0x103   :  { %p5777_p0 = scmp.ne.s32.totalorder %s6332_s15, %s5776_s4  ;;  %p5780_p1 = scmp.lt.u32.totalorder %s5776_s4, %s6332_s15 }
 0x105   :  { %p5782_p2 = pnand %p5780_p1, %p5777_p0 }
 0x107   :  { %5785 = shalt.err (!%p5782_p2)
}
 0x108   :  { %s5786_s3 = scalar_lea.vmem %s198_s26, 32  ;;  %p5791_p4 = scmp.lt.s32.totalorder %s198_s26, %s198_s26 }
 0x109   :  { %p5787_p3 = scmp.ne.s32.totalorder %s198_s26, %s5786_s3  ;;  %p5792_p5 = scmp.lt.s32.totalorder %s5786_s3, %s5786_s3 }
 0x10b   :  { %p5793_p6 = por %p5792_p5, %p5791_p4 }
 0x10d   :  { %p5794_p7 = pnand %p5793_p6, %p5787_p3 }
 0x10f   :  { %5797 = shalt.err (!%p5794_p7)
}
 0x110   :  { %200 = dma.hbm_to_vmem [thread:$0]  %s6332_s15, 32, %s198_s26, [#allocation25]  }
 0x111   :  { %s5881_s27 = smov [#allocation27]   ;;  %s5798_s29 = scalar_lea.hbm %s6333_s16, 32 }
 0x112   :  { %s207_s14 = sshll.u32 %s5881_s27, 4  ;;  %p5799_p8 = scmp.ne.s32.totalorder %s6333_s16, %s5798_s29  ;;  %s208_s14 = int_to_ptr.vmem [resolvable:$true] %s207_s14 }
 0x113   :  { %p5802_p9 = scmp.lt.u32.totalorder %s5798_s29, %s6333_s16 }
 0x115   :  { %p5804_p10 = pnand %p5802_p9, %p5799_p8 }
 0x117   :  { %5807 = shalt.err (!%p5804_p10)
}
 0x118   :  { %s5808_s7 = scalar_lea.vmem %s208_s14, 32  ;;  %p5813_p12 = scmp.lt.s32.totalorder %s208_s14, %s208_s14 }
 0x119   :  { %p5809_p11 = scmp.ne.s32.totalorder %s208_s14, %s5808_s7  ;;  %p5814_p13 = scmp.lt.s32.totalorder %s5808_s7, %s5808_s7 }
 0x11b   :  { %p5815_p0 = por %p5814_p13, %p5813_p12 }
 0x11d   :  { %p5816_p1 = pnand %p5815_p0, %p5809_p11 }
 0x11f   :  { %5819 = shalt.err (!%p5816_p1)
}
 0x120   :  { %210 = dma.hbm_to_vmem [thread:$0]  %s6333_s16, 32, %s208_s14, [#allocation28]  }
 0x121   :  { %5842 = dma.done.wait [#allocation4], 32  }
 0x122   :  { %5843 = vsyncadd [#allocation4], 4294967264 }
 0x123   :  { %5844 = dma.done.wait [#allocation7], 2240  }
 0x124   :  { %5845 = vsyncadd [#allocation7], 4294965056 }
 0x125   :  { %5846 = dma.done.wait [#allocation10], 4128  }
 0x126   :  { %5847 = vsyncadd [#allocation10], 4294963168 }
 0x127   :  { %5848 = dma.done.wait [#allocation13], 4128  }
 0x128   :  { %5849 = vsyncadd [#allocation13], 4294963168 }
 0x129   :  { %5850 = dma.done.wait [#allocation16], 4128  }
 0x12a   :  { %5851 = vsyncadd [#allocation16], 4294963168 }
 0x12b   :  { %5852 = dma.done.wait [#allocation19], 36896  }
 0x12c   :  { %5853 = vsyncadd [#allocation19], 4294930400 }
 0x12d   :  { %5854 = dma.done.wait [#allocation22], 12384  }
 0x12e   :  { %5855 = vsyncadd [#allocation22], 4294954912 }
 0x12f   :  { %5856 = dma.done.wait [#allocation25], 64  }
 0x130   :  { %5857 = vsyncadd [#allocation25], 4294967232 }
 0x131   :  { %5858 = dma.done.wait [#allocation28], 32  }
 0x132   :  { %5859 = vsyncadd [#allocation28], 4294967264  ;;  %v5882_v1 = vmov 0   ;;  %v4711_v2 = vld [vmem:[#allocation8 + $0x4] ss:$8 sps:$4 sm:$0xff]   ;;  %vm4067_vm0 = vcmask 1041408  }
 0x133   :  { %404 = vmatprep.mubr.bf16.mxu0 %v5882_v1  ;;  %v4713_v3 = vld [vmem:[#allocation8] ss:$8 sps:$4 sm:$0xff]   ;;  %372 = vmatprep.subr.bf16.mxu0 %v4711_v2  ;;  %v4714_v4 = vld [vmem:[#allocation8 + $0x14] ss:$8 sps:$4 sm:$0xff]   ;;  %v4716_v5 = vld [vmem:[#allocation8 + $0x10] ss:$8 sps:$4 sm:$0xff]  }
 0x134   :  { %373 = vmatpush1.bf16.msra.mxu0 %v4713_v3  ;;  %v4717_v6 = vld [vmem:[#allocation8 + $0x24] ss:$8 sps:$4 sm:$0xff]   ;;  %v4719_v7 = vld [vmem:[#allocation8 + $0x20] ss:$8 sps:$4 sm:$0xff]   ;;  %v4720_v8 = vld [vmem:[#allocation8 + $0x34] ss:$8 sps:$4 sm:$0xff]  }
 0x135   :  { %374 = vmatprep.subr.bf16.mxu0 %v4714_v4  ;;  %v4722_v9 = vld [vmem:[#allocation8 + $0x30] ss:$8 sps:$4 sm:$0xff]   ;;  %v4723_v10 = vld [vmem:[#allocation8 + $0x44] ss:$8 sps:$4 sm:$0xff]   ;;  %v4725_v14 = vld [vmem:[#allocation8 + $0x40] ss:$8 sps:$4 sm:$0xff]  }
 0x136   :  { %v4735_v11 = vld [vmem:[#allocation11 + $0x4] ss:$8 sps:$4 sm:$0xff]   ;;  %v4737_v12 = vld [vmem:[#allocation11] ss:$8 sps:$4 sm:$0xff]   ;;  %v4738_v13 = vld [vmem:[#allocation11 + $0x14] ss:$8 sps:$4 sm:$0xff]  }
 0x137   :  { %621 = vmatprep.subr.bf16.mxu1 %v4735_v11  ;;  %v4740_v15 = vld [vmem:[#allocation11 + $0x10] ss:$8 sps:$4 sm:$0xff]   ;;  %v4741_v16 = vld [vmem:[#allocation11 + $0x24] ss:$8 sps:$4 sm:$0xff]   ;;  %v4743_v19 = vld [vmem:[#allocation11 + $0x20] ss:$8 sps:$4 sm:$0xff]  }
 0x138   :  { %375 = vmatpush1.bf16.msra.mxu0 %v4716_v5  ;;  %622 = vmatpush1.bf16.msra.mxu1 %v4737_v12  ;;  %v4726_v17 = vld [vmem:[#allocation8 + $0x54] ss:$8 sps:$4 sm:$0xff]   ;;  %v4728_v18 = vld [vmem:[#allocation8 + $0x50] ss:$8 sps:$4 sm:$0xff]   ;;  %v4729_v21 = vld [vmem:[#allocation8 + $0x64] ss:$8 sps:$4 sm:$0xff]  }
 0x139   :  { %376 = vmatprep.subr.bf16.mxu0 %v4717_v6  ;;  %623 = vmatprep.subr.bf16.mxu1 %v4738_v13  ;;  %v4744_v20 = vld [vmem:[#allocation11 + $0x34] ss:$8 sps:$4 sm:$0xff]   ;;  %v4746_v23 = vld [vmem:[#allocation11 + $0x30] ss:$8 sps:$4 sm:$0xff]   ;;  %v4747_v24 = vld [vmem:[#allocation11 + $0x44] ss:$8 sps:$4 sm:$0xff]  }
 0x13a   :  { %v4731_v22 = vld [vmem:[#allocation8 + $0x60] ss:$8 sps:$4 sm:$0xff]   ;;  %v4732_v25 = vld [vmem:[#allocation8 + $0x74] ss:$8 sps:$4 sm:$0xff]   ;;  %v4734_v26 = vld [vmem:[#allocation8 + $0x70] ss:$8 sps:$4 sm:$0xff]  }
 0x13b   :  { %v262_v27 = vld [vmem:[#allocation3] sm:$0x3]  ;;  %v4749_v28 = vld [vmem:[#allocation11 + $0x40] ss:$8 sps:$4 sm:$0xff]   ;;  %v4750_v29 = vld [vmem:[#allocation11 + $0x54] ss:$8 sps:$4 sm:$0xff]  }
 0x13c   :  { %377 = vmatpush1.bf16.msra.mxu0 %v4719_v7  ;;  %624 = vmatpush1.bf16.msra.mxu1 %v4740_v15  ;;  %v4752_v30 = vld [vmem:[#allocation11 + $0x50] ss:$8 sps:$4 sm:$0xff]   ;;  %v4753_v31 = vld [vmem:[#allocation11 + $0x64] ss:$8 sps:$4 sm:$0xff]   ;;  %v263_v32 = vpack.c.bf16 %v262_v27, %v262_v27  ;;  %v4755_v33 = vld [vmem:[#allocation11 + $0x60] ss:$8 sps:$4 sm:$0xff]  }
 0x13d   :  { %378 = vmatprep.subr.bf16.mxu0 %v4720_v8  ;;  %625 = vmatprep.subr.bf16.mxu1 %v4741_v16  ;;  %v4756_v34 = vld [vmem:[#allocation11 + $0x74] ss:$8 sps:$4 sm:$0xff]   ;;  %v4758_v35 = vld [vmem:[#allocation11 + $0x70] ss:$8 sps:$4 sm:$0xff]   ;;  %v4759_v36 = vld [vmem:[#allocation11 + $0x84] ss:$8 sps:$4 sm:$0xff]   ;;  %v282_v16 = vlaneseq }
 0x13e   :  { %v4761_v37 = vld [vmem:[#allocation11 + $0x80] ss:$8 sps:$4 sm:$0xff]   ;;  %v4762_v38 = vld [vmem:[#allocation11 + $0x94] ss:$8 sps:$4 sm:$0xff]   ;;  %v4764_v39 = vld [vmem:[#allocation11 + $0x90] ss:$8 sps:$4 sm:$0xff]  }
 0x13f   :  { %v4765_v40 = vld [vmem:[#allocation11 + $0xa4] ss:$8 sps:$4 sm:$0xff]   ;;  %v4767_v41 = vld [vmem:[#allocation11 + $0xa0] ss:$8 sps:$4 sm:$0xff]   ;;  %v4768_v42 = vld [vmem:[#allocation11 + $0xb4] ss:$8 sps:$4 sm:$0xff]  }
 0x140   :  { %379 = vmatpush1.bf16.msra.mxu0 %v4722_v9  ;;  %626 = vmatpush1.bf16.msra.mxu1 %v4743_v19  ;;  %v4770_v43 = vld [vmem:[#allocation11 + $0xb0] ss:$8 sps:$4 sm:$0xff]   ;;  %v4771_v44 = vld [vmem:[#allocation11 + $0xc4] ss:$8 sps:$4 sm:$0xff]   ;;  %v4773_v45 = vld [vmem:[#allocation11 + $0xc0] ss:$8 sps:$4 sm:$0xff]  }
 0x141   :  { %380 = vmatprep.subr.bf16.mxu0 %v4723_v10  ;;  %627 = vmatprep.subr.bf16.mxu1 %v4744_v20  ;;  %v4774_v46 = vld [vmem:[#allocation11 + $0xd4] ss:$8 sps:$4 sm:$0xff]   ;;  %v4776_v47 = vld [vmem:[#allocation11 + $0xd0] ss:$8 sps:$4 sm:$0xff]   ;;  %v4777_v48 = vld [vmem:[#allocation11 + $0xe4] ss:$8 sps:$4 sm:$0xff]  }
 0x142   :  { %v4779_v49 = vld [vmem:[#allocation11 + $0xe0] ss:$8 sps:$4 sm:$0xff]   ;;  %v4780_v50 = vld [vmem:[#allocation11 + $0xf4] ss:$8 sps:$4 sm:$0xff]   ;;  %v4782_v51 = vld [vmem:[#allocation11 + $0xf0] ss:$8 sps:$4 sm:$0xff]  }
 0x143   :  { %v4783_v52 = vld [vmem:[#allocation14] ss:$8 sps:$4 sm:$0xff]   ;;  %v4785_v53 = vld [vmem:[#allocation14 + $0x4] ss:$8 sps:$4 sm:$0xff]   ;;  %v4788_v54 = vld [vmem:[#allocation14 + $0x14] ss:$8 sps:$4 sm:$0xff]  }
 0x144   :  { %381 = vmatpush1.bf16.msra.mxu0 %v4725_v14  ;;  %628 = vmatpush1.bf16.msra.mxu1 %v4746_v23  ;;  %v4786_v55 = vld [vmem:[#allocation14 + $0x10] ss:$8 sps:$4 sm:$0xff]   ;;  %v4791_v56 = vld [vmem:[#allocation14 + $0x24] ss:$8 sps:$4 sm:$0xff]   ;;  %v4789_v57 = vld [vmem:[#allocation14 + $0x20] ss:$8 sps:$4 sm:$0xff]  }
 0x145   :  { %382 = vmatprep.subr.bf16.mxu0 %v4726_v17  ;;  %629 = vmatprep.subr.bf16.mxu1 %v4747_v24  ;;  %v4794_v58 = vld [vmem:[#allocation14 + $0x34] ss:$8 sps:$4 sm:$0xff]   ;;  %v4792_v59 = vld [vmem:[#allocation14 + $0x30] ss:$8 sps:$4 sm:$0xff]   ;;  %v4797_v60 = vld [vmem:[#allocation14 + $0x44] ss:$8 sps:$4 sm:$0xff]  }
 0x146   :  { %v4795_v61 = vld [vmem:[#allocation14 + $0x40] ss:$8 sps:$4 sm:$0xff]   ;;  %v4800_v62 = vld [vmem:[#allocation14 + $0x54] ss:$8 sps:$4 sm:$0xff]   ;;  %v4798_v63 = vld [vmem:[#allocation14 + $0x50] ss:$8 sps:$4 sm:$0xff]  }
 0x147   :  { %v4803_v0 = vld [vmem:[#allocation14 + $0x64] ss:$8 sps:$4 sm:$0xff]   ;;  %v4801_v1 = vld [vmem:[#allocation14 + $0x60] ss:$8 sps:$4 sm:$0xff]   ;;  %v4806_v2 = vld [vmem:[#allocation14 + $0x74] ss:$8 sps:$4 sm:$0xff]  }
 0x148   :  { %383 = vmatpush1.bf16.msra.mxu0 %v4728_v18  ;;  %630 = vmatpush1.bf16.msra.mxu1 %v4749_v28  ;;  %v4804_v3 = vld [vmem:[#allocation14 + $0x70] ss:$8 sps:$4 sm:$0xff]   ;;  %v4809_v4 = vld [vmem:[#allocation14 + $0x84] ss:$8 sps:$4 sm:$0xff]   ;;  %v4807_v5 = vld [vmem:[#allocation14 + $0x80] ss:$8 sps:$4 sm:$0xff]  }
 0x149   :  { %384 = vmatprep.subr.bf16.mxu0 %v4729_v21  ;;  %631 = vmatprep.subr.bf16.mxu1 %v4750_v29  ;;  %v4812_v6 = vld [vmem:[#allocation14 + $0x94] ss:$8 sps:$4 sm:$0xff]   ;;  %v4810_v7 = vld [vmem:[#allocation14 + $0x90] ss:$8 sps:$4 sm:$0xff]   ;;  %v4815_v8 = vld [vmem:[#allocation14 + $0xa4] ss:$8 sps:$4 sm:$0xff]  }
 0x14a   :  { %v4813_v9 = vld [vmem:[#allocation14 + $0xa0] ss:$8 sps:$4 sm:$0xff]   ;;  %v4818_v10 = vld [vmem:[#allocation14 + $0xb4] ss:$8 sps:$4 sm:$0xff]   ;;  %v4816_v11 = vld [vmem:[#allocation14 + $0xb0] ss:$8 sps:$4 sm:$0xff]  }
 0x14b   :  { %v4821_v12 = vld [vmem:[#allocation14 + $0xc4] ss:$8 sps:$4 sm:$0xff]   ;;  %v4819_v13 = vld [vmem:[#allocation14 + $0xc0] ss:$8 sps:$4 sm:$0xff]   ;;  %v4824_v14 = vld [vmem:[#allocation14 + $0xd4] ss:$8 sps:$4 sm:$0xff]  }
 0x14c   :  { %385 = vmatpush1.bf16.msra.mxu0 %v4731_v22  ;;  %632 = vmatpush1.bf16.msra.mxu1 %v4752_v30  ;;  %v4822_v15 = vld [vmem:[#allocation14 + $0xd0] ss:$8 sps:$4 sm:$0xff]   ;;  %v6195_v17 = vshrl.u32 %v282_v16, 7  ;;  %v280_v19 = vld [vmem:[#allocation9] sm:$0x3]  ;;  %vm4101_vm1 = vcmask 1024  }
 0x14d   :  { %386 = vmatprep.subr.bf16.mxu0 %v4732_v25  ;;  %633 = vmatprep.subr.bf16.mxu1 %v4753_v31  ;;  %v4860_v16 = vld [vmem:[#allocation20 + $0x1b4] ss:$24 sps:$4 sm:$0xff]   ;;  %s6347_s24 = sld [smem:[#allocation42_spill]]  ;;  %s5884_s17 = smov [#allocation29]   ;;  %vm4119_vm2 = vcmask 0  }
 0x14e   :  { %v6198_v18 = vsub.s32 0, %v6195_v17  ;;  %v6201_v20 = vsub.s32 1, %v6195_v17  ;;  %s4127_s6 = sshll.u32 %s5884_s17, 4  ;;  %s4128_s6 = int_to_ptr.vmem [resolvable:$true] %s4127_s6 }
 0x14f   :  { %s5824_s23 = scalar_lea.vmem %s4128_s6, 32  ;;  %p5825_p3 = scmp.lt.s32.totalorder %s4128_s6, %s4128_s6 }
 0x150   :  { %387 = vmatpush1.bf16.msra.mxu0 %v4734_v26  ;;  %634 = vmatpush1.bf16.msra.mxu1 %v4755_v33  ;;  %v285_v21 = vrot.slane %v280_v19, %v6198_v18  ;;  %v289_v22 = vrot.slane %v280_v19, %v6201_v20  ;;  %v4827_v33 = vld [vmem:[#allocation14 + $0xe4] ss:$8 sps:$4 sm:$0xff]  }
 0x151   :  { %635 = vmatprep.subr.bf16.mxu1 %v4756_v34  ;;  %870 = vmatprep.subr.bf16.mxu0 %v4785_v53  ;;  %v4825_v34 = vld [vmem:[#allocation14 + $0xe0] ss:$8 sps:$4 sm:$0xff]   ;;  %v4858_v19 = vld [vmem:[#allocation20 + $0x1b0] ss:$24 sps:$4 sm:$0xff]  }
 0x153   :  { %405 = vmatmul.mubr.bf16.vlgmr.msra.gmra.mrb[0].mxu0 %v263_v32 }
 0x154   :  { %636 = vmatpush1.bf16.msra.mxu1 %v4758_v35  ;;  %871 = vmatpush1.bf16.msra.mxu0 %v4783_v52  ;;  %v4830_v35 = vld [vmem:[#allocation14 + $0xf4] ss:$8 sps:$4 sm:$0xff]  }
 0x155   :  { %637 = vmatprep.subr.bf16.mxu1 %v4759_v36  ;;  %872 = vmatprep.subr.bf16.mxu0 %v4788_v54  ;;  %v4828_v36 = vld [vmem:[#allocation14 + $0xf0] ss:$8 sps:$4 sm:$0xff]  }
 0x158   :  { %638 = vmatpush1.bf16.msra.mxu1 %v4761_v37  ;;  %873 = vmatpush1.bf16.msra.mxu0 %v4786_v55  ;;  %v4833_v37 = vld [vmem:[#allocation20 + $0x4] ss:$24 sps:$4 sm:$0xff]  }
 0x159   :  { %639 = vmatprep.subr.bf16.mxu1 %v4762_v38  ;;  %874 = vmatprep.subr.bf16.mxu0 %v4791_v56  ;;  %v5883_v38 = vmov 1983009808  }
 0x15c   :  { %640 = vmatpush1.bf16.msra.mxu1 %v4764_v39  ;;  %875 = vmatpush1.bf16.msra.mxu0 %v4789_v57  ;;  %v1166_v39 = vunpack.c.l.s4 %v5883_v38  ;;  %v4831_v57 = vld [vmem:[#allocation20] ss:$24 sps:$4 sm:$0xff]  }
 0x15d   :  { %641 = vmatprep.subr.bf16.mxu1 %v4765_v40  ;;  %876 = vmatprep.subr.bf16.mxu0 %v4794_v58  ;;  %v4985_v38 = vld [vmem:[#allocation17 + $0x60] ss:$8 sps:$4 sm:$0xff]  }
 0x15e   :  { %v1167_v40 = vunpack.c.0.s8 %v1166_v39  ;;  %v4987_v39 = vld [vmem:[#allocation17 + $0x64] ss:$8 sps:$4 sm:$0xff]  }
 0x160   :  { %642 = vmatpush1.bf16.msra.mxu1 %v4767_v41  ;;  %877 = vmatpush1.bf16.msra.mxu0 %v4792_v59  ;;  %v449_v41 = vld [vmem:[#allocation12] sm:$0x3] }
 0x161   :  { %643 = vmatprep.subr.bf16.mxu1 %v4768_v42  ;;  %878 = vmatprep.subr.bf16.mxu0 %v4797_v60  ;;  %v6206_v42 = vsub.s32 %v1167_v40, %v6195_v17  ;;  %v4836_v60 = vld [vmem:[#allocation20 + $0x34] ss:$24 sps:$4 sm:$0xff]   ;;  %v4875_v40 = vld [vmem:[#allocation20 + $0x2a4] ss:$24 sps:$4 sm:$0xff]  }
 0x164   :  { %644 = vmatpush1.bf16.msra.mxu1 %v4770_v43  ;;  %879 = vmatpush1.bf16.msra.mxu0 %v4795_v61  ;;  %v6208_v43 = vld [vmem:[#allocation6] sm:$0xff] }
 0x165   :  { %645 = vmatprep.subr.bf16.mxu1 %v4771_v44  ;;  %880 = vmatprep.subr.bf16.mxu0 %v4800_v62  ;;  %v454_v44 = vrot.slane %v449_v41, %v6198_v18  ;;  %v4834_v61 = vld [vmem:[#allocation20 + $0x30] ss:$24 sps:$4 sm:$0xff]   ;;  %v4839_v62 = vld [vmem:[#allocation20 + $0x64] ss:$24 sps:$4 sm:$0xff]  }
 0x168   :  { %646 = vmatpush1.bf16.msra.mxu1 %v4773_v45  ;;  %881 = vmatpush1.bf16.msra.mxu0 %v4798_v63  ;;  %v458_v45 = vrot.slane %v449_v41, %v6201_v20  ;;  %v4837_v63 = vld [vmem:[#allocation20 + $0x60] ss:$24 sps:$4 sm:$0xff]  }
 0x169   :  { %647 = vmatprep.subr.bf16.mxu1 %v4774_v46  ;;  %882 = vmatprep.subr.bf16.mxu0 %v4803_v0  ;;  %v6214_v46 = vrot.slane %v6208_v43, %v6206_v42  ;;  %v4842_v0 = vld [vmem:[#allocation20 + $0x94] ss:$24 sps:$4 sm:$0xff]   ;;  %v4873_v41 = vld [vmem:[#allocation20 + $0x2a0] ss:$24 sps:$4 sm:$0xff]  }
 0x16b   :  { %v1179_v52 = vcombine.high %v6214_v46, %v6214_v46 }
 0x16c   :  { %648 = vmatpush1.bf16.msra.mxu1 %v4776_v47  ;;  %883 = vmatpush1.bf16.msra.mxu0 %v4801_v1  ;;  %v4840_v1 = vld [vmem:[#allocation20 + $0x90] ss:$24 sps:$4 sm:$0xff]  }
 0x16d   :  { %649 = vmatprep.subr.bf16.mxu1 %v4777_v48  ;;  %884 = vmatprep.subr.bf16.mxu0 %v4806_v2  ;;  %v6218_v58 = vpack.c.bf16 %v1179_v52, %v1179_v52  ;;  %v4845_v2 = vld [vmem:[#allocation20 + $0xc4] ss:$24 sps:$4 sm:$0xff]  }
 0x16e   :  { %v4881_v52 = vld [vmem:[#allocation20 + $0x304] ss:$24 sps:$4 sm:$0xff]  }
 0x170   :  { %650 = vmatpush1.bf16.msra.mxu1 %v4779_v49  ;;  %885 = vmatpush1.bf16.msra.mxu0 %v4804_v3  ;;  %v4843_v3 = vld [vmem:[#allocation20 + $0xc0] ss:$24 sps:$4 sm:$0xff]  }
 0x171   :  { %651 = vmatprep.subr.bf16.mxu1 %v4780_v50  ;;  %886 = vmatprep.subr.bf16.mxu0 %v4809_v4  ;;  %v4848_v4 = vld [vmem:[#allocation20 + $0xf4] ss:$24 sps:$4 sm:$0xff]  }
 0x174   :  { %652 = vmatpush1.bf16.msra.mxu1 %v4782_v51  ;;  %887 = vmatpush1.bf16.msra.mxu0 %v4807_v5  ;;  %v4846_v5 = vld [vmem:[#allocation20 + $0xf0] ss:$24 sps:$4 sm:$0xff]  }
 0x175   :  { %888 = vmatprep.subr.bf16.mxu0 %v4812_v6  ;;  %v4851_v6 = vld [vmem:[#allocation20 + $0x124] ss:$24 sps:$4 sm:$0xff]  }
 0x178   :  { %889 = vmatpush1.bf16.msra.mxu0 %v4810_v7  ;;  %v4849_v7 = vld [vmem:[#allocation20 + $0x120] ss:$24 sps:$4 sm:$0xff]  }
 0x179   :  { %890 = vmatprep.subr.bf16.mxu0 %v4815_v8  ;;  %v4854_v8 = vld [vmem:[#allocation20 + $0x154] ss:$24 sps:$4 sm:$0xff]  }
 0x17c   :  { %891 = vmatpush1.bf16.msra.mxu0 %v4813_v9  ;;  %v4852_v9 = vld [vmem:[#allocation20 + $0x150] ss:$24 sps:$4 sm:$0xff]  }
 0x17d   :  { %892 = vmatprep.subr.bf16.mxu0 %v4818_v10  ;;  %v4949_v10 = vld [vmem:[#allocation17] ss:$8 sps:$4 sm:$0xff]  }
 0x180   :  { %893 = vmatpush1.bf16.msra.mxu0 %v4816_v11  ;;  %v4951_v11 = vld [vmem:[#allocation17 + $0x4] ss:$8 sps:$4 sm:$0xff]  }
 0x181   :  { %894 = vmatprep.subr.bf16.mxu0 %v4821_v12  ;;  %v4857_v12 = vld [vmem:[#allocation20 + $0x184] ss:$24 sps:$4 sm:$0xff]   ;;  %1119 = vmatprep.subr.bf16.mxu1 %v4951_v11 }
 0x182   :  { %v4899_v11 = vld [vmem:[#allocation20 + $0x424] ss:$24 sps:$4 sm:$0xff]  }
 0x184   :  { %895 = vmatpush1.bf16.msra.mxu0 %v4819_v13  ;;  %v4855_v13 = vld [vmem:[#allocation20 + $0x180] ss:$24 sps:$4 sm:$0xff]  }
 0x185   :  { %896 = vmatprep.subr.bf16.mxu0 %v4824_v14  ;;  %v4955_v14 = vld [vmem:[#allocation17 + $0x10] ss:$8 sps:$4 sm:$0xff]  }
 0x188   :  { %897 = vmatpush1.bf16.msra.mxu0 %v4822_v15  ;;  %v4957_v15 = vld [vmem:[#allocation17 + $0x14] ss:$8 sps:$4 sm:$0xff]  }
 0x189   :  { %898 = vmatprep.subr.bf16.mxu0 %v4827_v33  ;;  %v4979_v33 = vld [vmem:[#allocation17 + $0x50] ss:$8 sps:$4 sm:$0xff]  }
 0x18c   :  { %899 = vmatpush1.bf16.msra.mxu0 %v4825_v34  ;;  %v4981_v34 = vld [vmem:[#allocation17 + $0x54] ss:$8 sps:$4 sm:$0xff]  }
 0x18d   :  { %900 = vmatprep.subr.bf16.mxu0 %v4830_v35  ;;  %v4872_v35 = vld [vmem:[#allocation20 + $0x274] ss:$24 sps:$4 sm:$0xff]  }
 0x190   :  { %901 = vmatpush1.bf16.msra.mxu0 %v4828_v36  ;;  %v4870_v36 = vld [vmem:[#allocation20 + $0x270] ss:$24 sps:$4 sm:$0xff]  }
 0x191   :  { %2961 = vmatprep.subr.bf16.mxu0 %v4833_v37  ;;  %v1164_v37 = vcombine.high %v6208_v43, %v6208_v43 }
 0x226   :  { %v406_v23 = vpop.f32.mrb[0].mxu0 }
 0x227   :  { %v407_v24 = vadd.f32 %v406_v23, %v285_v21  ;;  %v408_v25 = vpop.f32.mrb[1].mxu0  ;;  %v4961_v21 = vld [vmem:[#allocation17 + $0x20] ss:$8 sps:$4 sm:$0xff]  }
 0x228   :  { %v409_v26 = vadd.f32 %v408_v25, %v289_v22  ;;  %v410_v27 = vpop.f32.mrb[2].mxu0  ;;  %v4963_v22 = vld [vmem:[#allocation17 + $0x24] ss:$8 sps:$4 sm:$0xff]   ;;  %v4967_v25 = vld [vmem:[#allocation17 + $0x30] ss:$8 sps:$4 sm:$0xff]  }
 0x229   :  { %v413_v28 = vmax.f32 %v407_v24, 0.0  ;;  %v411_v29 = vpop.f32.mrb[3].mxu0  ;;  %v4863_v23 = vld [vmem:[#allocation20 + $0x1e4] ss:$24 sps:$4 sm:$0xff]   ;;  %v4861_v24 = vld [vmem:[#allocation20 + $0x1e0] ss:$24 sps:$4 sm:$0xff]  }
 0x22a   :  { %v414_v30 = vmax.f32 %v409_v26, 0.0  ;;  %v4969_v26 = vld [vmem:[#allocation17 + $0x34] ss:$8 sps:$4 sm:$0xff]   ;;  %v4973_v29 = vld [vmem:[#allocation17 + $0x40] ss:$8 sps:$4 sm:$0xff]  }
 0x22b   :  { %v415_v32 = vpack.c.bf16 %v413_v28, %v413_v28  ;;  %v4866_v27 = vld [vmem:[#allocation20 + $0x214] ss:$24 sps:$4 sm:$0xff]   ;;  %v4864_v28 = vld [vmem:[#allocation20 + $0x210] ss:$24 sps:$4 sm:$0xff]  }
 0x22c   :  { %v416_v31 = vpack.c.bf16 %v414_v30, %v414_v30  ;;  %v4975_v30 = vld [vmem:[#allocation17 + $0x44] ss:$8 sps:$4 sm:$0xff]  }
 0x22e   :  { %653 = vmatprep.mubr.bf16.mxu1 %v416_v31  ;;  %v4869_v31 = vld [vmem:[#allocation20 + $0x244] ss:$24 sps:$4 sm:$0xff]  }
 0x22f   :  { %654 = vmatmul.mubr.bf16.vlgmr.msra.gmra.mrb[0].mxu1 %v415_v32  ;;  %v4867_v32 = vld [vmem:[#allocation20 + $0x240] ss:$24 sps:$4 sm:$0xff]  }
 0x230   :  { %1120 = vmatpush1.bf16.msra.mxu1 %v4949_v10  ;;  %v4894_v10 = vld [vmem:[#allocation20 + $0x3f0] ss:$24 sps:$4 sm:$0xff]  }
 0x231   :  { %1121 = vmatprep.subr.bf16.mxu1 %v4957_v15  ;;  %v4902_v15 = vld [vmem:[#allocation20 + $0x454] ss:$24 sps:$4 sm:$0xff]  }
 0x234   :  { %1122 = vmatpush1.bf16.msra.mxu1 %v4955_v14  ;;  %v4897_v14 = vld [vmem:[#allocation20 + $0x420] ss:$24 sps:$4 sm:$0xff]  }
 0x235   :  { %1123 = vmatprep.subr.bf16.mxu1 %v4963_v22  ;;  %v4905_v22 = vld [vmem:[#allocation20 + $0x484] ss:$24 sps:$4 sm:$0xff]  }
 0x238   :  { %1124 = vmatpush1.bf16.msra.mxu1 %v4961_v21  ;;  %v4900_v21 = vld [vmem:[#allocation20 + $0x450] ss:$24 sps:$4 sm:$0xff]  }
 0x239   :  { %1125 = vmatprep.subr.bf16.mxu1 %v4969_v26  ;;  %v4906_v26 = vld [vmem:[#allocation20 + $0x4b0] ss:$24 sps:$4 sm:$0xff]  }
 0x23c   :  { %1126 = vmatpush1.bf16.msra.mxu1 %v4967_v25  ;;  %v4908_v25 = vld [vmem:[#allocation20 + $0x4b4] ss:$24 sps:$4 sm:$0xff]  }
 0x23d   :  { %1127 = vmatprep.subr.bf16.mxu1 %v4975_v30  ;;  %v4912_v30 = vld [vmem:[#allocation20 + $0x510] ss:$24 sps:$4 sm:$0xff]  }
 0x240   :  { %1128 = vmatpush1.bf16.msra.mxu1 %v4973_v29  ;;  %v4914_v29 = vld [vmem:[#allocation20 + $0x514] ss:$24 sps:$4 sm:$0xff]  }
 0x241   :  { %1129 = vmatprep.subr.bf16.mxu1 %v4981_v34  ;;  %v4918_v34 = vld [vmem:[#allocation20 + $0x570] ss:$24 sps:$4 sm:$0xff]  }
 0x244   :  { %1130 = vmatpush1.bf16.msra.mxu1 %v4979_v33  ;;  %v4920_v33 = vld [vmem:[#allocation20 + $0x574] ss:$24 sps:$4 sm:$0xff]  }
 0x245   :  { %1131 = vmatprep.subr.bf16.mxu1 %v4987_v39  ;;  %v4924_v39 = vld [vmem:[#allocation20 + $0x5d0] ss:$24 sps:$4 sm:$0xff]  }
 0x248   :  { %1132 = vmatpush1.bf16.msra.mxu1 %v4985_v38  ;;  %v6236_v38 = vld.sshfl [vmem:[#allocation6 + $0x8] sm:$0x33 pattern:$0x76325410] }
 0x302   :  { %v655_v47 = vpop.f32.mrb[0].mxu1 }
 0x303   :  { %v656_v48 = vadd.f32 %v655_v47, %v454_v44  ;;  %v657_v49 = vpop.f32.mrb[1].mxu1  ;;  %v6224_v44 = vrot.slane %v1164_v37, %v6206_v42  ;;  %v4993_v47 = vld [vmem:[#allocation17 + $0x74] ss:$8 sps:$4 sm:$0xff]   ;;  %v6230_v42 = vpack.c.bf16 %v6214_v46, %v6214_v46  ;;  %v5011_v46 = vld [vmem:[#allocation17 + $0xa4] ss:$8 sps:$4 sm:$0xff]  }
 0x304   :  { %v658_v50 = vadd.f32 %v657_v49, %v458_v45  ;;  %v659_v51 = vpop.f32.mrb[2].mxu1  ;;  %v4991_v45 = vld [vmem:[#allocation17 + $0x70] ss:$8 sps:$4 sm:$0xff]   ;;  %1133 = vmatprep.subr.bf16.mxu1 %v4993_v47 }
 0x305   :  { %v662_v53 = vmax.f32 %v656_v48, 0.0  ;;  %v660_v54 = vpop.f32.mrb[3].mxu1  ;;  %v4878_v48 = vld [vmem:[#allocation20 + $0x2d4] ss:$24 sps:$4 sm:$0xff]   ;;  %1134 = vmatpush1.bf16.msra.mxu1 %v4991_v45  ;;  %v4876_v49 = vld [vmem:[#allocation20 + $0x2d0] ss:$24 sps:$4 sm:$0xff]   ;;  %v1180_v43 = vcombine.high %v6224_v44, %v6224_v44  ;;  %v6242_v45 = vpack.c.bf16 %v6224_v44, %v6224_v44 }
 0x306   :  { %v663_v55 = vmax.f32 %v658_v50, 0.0  ;;  %v4997_v50 = vld [vmem:[#allocation17 + $0x80] ss:$8 sps:$4 sm:$0xff]   ;;  %v4999_v51 = vld [vmem:[#allocation17 + $0x84] ss:$8 sps:$4 sm:$0xff]  }
 0x307   :  { %v664_v59 = vpack.c.bf16 %v662_v53, %v662_v53  ;;  %1135 = vmatprep.subr.bf16.mxu1 %v4999_v51  ;;  %v4879_v53 = vld [vmem:[#allocation20 + $0x300] ss:$24 sps:$4 sm:$0xff]   ;;  %v6232_v54 = vpack.c.bf16 %v1180_v43, %v1180_v43  ;;  %v4926_v37 = vld [vmem:[#allocation20 + $0x5d4] ss:$24 sps:$4 sm:$0xff]   ;;  %v4931_v43 = vld [vmem:[#allocation20 + $0x630] ss:$24 sps:$4 sm:$0xff]  }
 0x308   :  { %v665_v56 = vpack.c.bf16 %v663_v55, %v663_v55  ;;  %v5003_v55 = vld [vmem:[#allocation17 + $0x90] ss:$8 sps:$4 sm:$0xff]  }
 0x309   :  { %1136 = vmatpush1.bf16.msra.mxu1 %v4997_v50  ;;  %v4928_v47 = vld [vmem:[#allocation20 + $0x600] ss:$24 sps:$4 sm:$0xff]   ;;  %v4936_v50 = vld [vmem:[#allocation20 + $0x664] ss:$24 sps:$4 sm:$0xff]   ;;  %v4937_v44 = vld [vmem:[#allocation20 + $0x690] ss:$24 sps:$4 sm:$0xff]  }
 0x30a   :  { %902 = vmatprep.mubr.bf16.mxu0 %v665_v56  ;;  %v5005_v56 = vld [vmem:[#allocation17 + $0x94] ss:$8 sps:$4 sm:$0xff]  }
 0x30b   :  { %903 = vmatmul.mubr.bf16.vlgmr.msra.gmra.mrb[4].mxu0 %v664_v59  ;;  %1137 = vmatprep.subr.bf16.mxu1 %v5005_v56  ;;  %v4882_v59 = vld [vmem:[#allocation20 + $0x330] ss:$24 sps:$4 sm:$0xff]   ;;  %v4934_v51 = vld [vmem:[#allocation20 + $0x660] ss:$24 sps:$4 sm:$0xff]   ;;  %v4945_v56 = vld [vmem:[#allocation20 + $0x6f4] ss:$24 sps:$4 sm:$0xff]  }
 0x30c   :  { %2962 = vmatpush1.bf16.msra.mxu0 %v4831_v57  ;;  %2993 = vmatprep.mubr.bf16.mxu0 %v6218_v58  ;;  %v4884_v57 = vld [vmem:[#allocation20 + $0x334] ss:$24 sps:$4 sm:$0xff]  }
 0x30d   :  { %2963 = vmatprep.subr.bf16.mxu0 %v4836_v60  ;;  %1138 = vmatpush1.bf16.msra.mxu1 %v5003_v55  ;;  %v5009_v60 = vld [vmem:[#allocation17 + $0xa0] ss:$8 sps:$4 sm:$0xff]  }
 0x30e   :  { %1139 = vmatprep.subr.bf16.mxu1 %v5011_v46  ;;  %v4940_v55 = vld [vmem:[#allocation20 + $0x6c0] ss:$24 sps:$4 sm:$0xff]   ;;  %v4954_v46 = vld [vmem:[#allocation20 + $0x754] ss:$24 sps:$4 sm:$0xff]  }
 0x310   :  { %2964 = vmatpush1.bf16.msra.mxu0 %v4834_v61  ;;  %v4887_v61 = vld [vmem:[#allocation20 + $0x364] ss:$24 sps:$4 sm:$0xff]  }
 0x311   :  { %2965 = vmatprep.subr.bf16.mxu0 %v4839_v62  ;;  %1140 = vmatpush1.bf16.msra.mxu1 %v5009_v60  ;;  %v4885_v62 = vld [vmem:[#allocation20 + $0x360] ss:$24 sps:$4 sm:$0xff]  }
 0x312   :  { %v4946_v60 = vld [vmem:[#allocation20 + $0x720] ss:$24 sps:$4 sm:$0xff]  }
 0x314   :  { %2966 = vmatpush1.bf16.msra.mxu0 %v4837_v63  ;;  %v5015_v63 = vld [vmem:[#allocation17 + $0xb0] ss:$8 sps:$4 sm:$0xff]  }
 0x315   :  { %2967 = vmatprep.subr.bf16.mxu0 %v4842_v0  ;;  %v5017_v0 = vld [vmem:[#allocation17 + $0xb4] ss:$8 sps:$4 sm:$0xff]  }
 0x316   :  { %1141 = vmatprep.subr.bf16.mxu1 %v5017_v0  ;;  %v4966_v0 = vld [vmem:[#allocation20 + $0x7b4] ss:$24 sps:$4 sm:$0xff]  }
 0x317   :  { %1142 = vmatpush1.bf16.msra.mxu1 %v5015_v63  ;;  %v4958_v63 = vld [vmem:[#allocation20 + $0x780] ss:$24 sps:$4 sm:$0xff]  }
 0x318   :  { %2968 = vmatpush1.bf16.msra.mxu0 %v4840_v1  ;;  %v4890_v1 = vld [vmem:[#allocation20 + $0x394] ss:$24 sps:$4 sm:$0xff]  }
 0x319   :  { %2969 = vmatprep.subr.bf16.mxu0 %v4845_v2  ;;  %v4888_v2 = vld [vmem:[#allocation20 + $0x390] ss:$24 sps:$4 sm:$0xff]  }
 0x31c   :  { %2970 = vmatpush1.bf16.msra.mxu0 %v4843_v3  ;;  %v5021_v3 = vld [vmem:[#allocation17 + $0xc0] ss:$8 sps:$4 sm:$0xff]  }
 0x31d   :  { %2971 = vmatprep.subr.bf16.mxu0 %v4848_v4  ;;  %v5023_v4 = vld [vmem:[#allocation17 + $0xc4] ss:$8 sps:$4 sm:$0xff]  }
 0x31e   :  { %1143 = vmatprep.subr.bf16.mxu1 %v5023_v4  ;;  %v4978_v4 = vld [vmem:[#allocation20 + $0x814] ss:$24 sps:$4 sm:$0xff]  }
 0x31f   :  { %1144 = vmatpush1.bf16.msra.mxu1 %v5021_v3  ;;  %v4970_v3 = vld [vmem:[#allocation20 + $0x7e0] ss:$24 sps:$4 sm:$0xff]  }
 0x320   :  { %2972 = vmatpush1.bf16.msra.mxu0 %v4846_v5  ;;  %v4893_v5 = vld [vmem:[#allocation20 + $0x3c4] ss:$24 sps:$4 sm:$0xff]  }
 0x321   :  { %2973 = vmatprep.subr.bf16.mxu0 %v4851_v6  ;;  %v4891_v6 = vld [vmem:[#allocation20 + $0x3c0] ss:$24 sps:$4 sm:$0xff]  }
 0x324   :  { %2974 = vmatpush1.bf16.msra.mxu0 %v4849_v7  ;;  %v5027_v7 = vld [vmem:[#allocation17 + $0xd0] ss:$8 sps:$4 sm:$0xff]  }
 0x325   :  { %2975 = vmatprep.subr.bf16.mxu0 %v4854_v8  ;;  %v5029_v8 = vld [vmem:[#allocation17 + $0xd4] ss:$8 sps:$4 sm:$0xff]  }
 0x326   :  { %1145 = vmatprep.subr.bf16.mxu1 %v5029_v8  ;;  %v4990_v8 = vld [vmem:[#allocation20 + $0x874] ss:$24 sps:$4 sm:$0xff]  }
 0x327   :  { %1146 = vmatpush1.bf16.msra.mxu1 %v5027_v7  ;;  %v4982_v7 = vld [vmem:[#allocation20 + $0x840] ss:$24 sps:$4 sm:$0xff]  }
 0x328   :  { %2976 = vmatpush1.bf16.msra.mxu0 %v4852_v9  ;;  %v4896_v9 = vld [vmem:[#allocation20 + $0x3f4] ss:$24 sps:$4 sm:$0xff]  }
 0x329   :  { %2977 = vmatprep.subr.bf16.mxu0 %v4857_v12  ;;  %v5035_v12 = vld [vmem:[#allocation17 + $0xe4] ss:$8 sps:$4 sm:$0xff]  }
 0x32a   :  { %1147 = vmatprep.subr.bf16.mxu1 %v5035_v12  ;;  %v5002_v12 = vld [vmem:[#allocation20 + $0x8d4] ss:$24 sps:$4 sm:$0xff]  }
 0x32c   :  { %2978 = vmatpush1.bf16.msra.mxu0 %v4855_v13  ;;  %v5033_v13 = vld [vmem:[#allocation17 + $0xe0] ss:$8 sps:$4 sm:$0xff]  }
 0x32d   :  { %2979 = vmatprep.subr.bf16.mxu0 %v4860_v16  ;;  %1148 = vmatpush1.bf16.msra.mxu1 %v5033_v13  ;;  %v5041_v16 = vld [vmem:[#allocation17 + $0xf4] ss:$8 sps:$4 sm:$0xff]  }
 0x32e   :  { %1149 = vmatprep.subr.bf16.mxu1 %v5041_v16  ;;  %v5000_v13 = vld [vmem:[#allocation20 + $0x8d0] ss:$24 sps:$4 sm:$0xff]  }
 0x32f   :  { %v5006_v16 = vld [vmem:[#allocation20 + $0x10] ss:$24 sps:$4 sm:$0xff]  }
 0x330   :  { %2980 = vmatpush1.bf16.msra.mxu0 %v4858_v19  ;;  %v5039_v19 = vld [vmem:[#allocation17 + $0xf0] ss:$8 sps:$4 sm:$0xff]  }
 0x331   :  { %2981 = vmatprep.subr.bf16.mxu0 %v4863_v23  ;;  %1150 = vmatpush1.bf16.msra.mxu1 %v5039_v19  ;;  %v5047_v23 = vld [vmem:[#allocation20 + $0xc] ss:$24 sps:$4 sm:$0xff]  }
 0x332   :  { %3084 = vmatprep.subr.bf16.mxu1 %v5047_v23  ;;  %v5014_v19 = vld [vmem:[#allocation20 + $0x44] ss:$24 sps:$4 sm:$0xff]   ;;  %v5018_v23 = vld [vmem:[#allocation20 + $0x70] ss:$24 sps:$4 sm:$0xff]  }
 0x334   :  { %2982 = vmatpush1.bf16.msra.mxu0 %v4861_v24  ;;  %v4903_v24 = vld [vmem:[#allocation20 + $0x480] ss:$24 sps:$4 sm:$0xff]  }
 0x335   :  { %2983 = vmatprep.subr.bf16.mxu0 %v4866_v27  ;;  %v4911_v27 = vld [vmem:[#allocation20 + $0x4e4] ss:$24 sps:$4 sm:$0xff]  }
 0x338   :  { %2984 = vmatpush1.bf16.msra.mxu0 %v4864_v28  ;;  %v4909_v28 = vld [vmem:[#allocation20 + $0x4e0] ss:$24 sps:$4 sm:$0xff]  }
 0x339   :  { %2985 = vmatprep.subr.bf16.mxu0 %v4869_v31  ;;  %v4917_v31 = vld [vmem:[#allocation20 + $0x544] ss:$24 sps:$4 sm:$0xff]  }
 0x33c   :  { %2986 = vmatpush1.bf16.msra.mxu0 %v4867_v32  ;;  %v4915_v32 = vld [vmem:[#allocation20 + $0x540] ss:$24 sps:$4 sm:$0xff]  }
 0x33d   :  { %2987 = vmatprep.subr.bf16.mxu0 %v4872_v35  ;;  %v4923_v35 = vld [vmem:[#allocation20 + $0x5a4] ss:$24 sps:$4 sm:$0xff]  }
 0x340   :  { %2988 = vmatpush1.bf16.msra.mxu0 %v4870_v36  ;;  %v4921_v36 = vld [vmem:[#allocation20 + $0x5a0] ss:$24 sps:$4 sm:$0xff]  }
 0x341   :  { %2989 = vmatprep.subr.bf16.mxu0 %v4875_v40  ;;  %v1188_v40 = vcombine.high %v6236_v38, %v6236_v38 }
 0x344   :  { %2990 = vmatpush1.bf16.msra.mxu0 %v4873_v41  ;;  %v4930_v41 = vld [vmem:[#allocation20 + $0x604] ss:$24 sps:$4 sm:$0xff]  }
 0x345   :  { %2991 = vmatprep.subr.bf16.mxu0 %v4878_v48  ;;  %v6244_v48 = vpack.c.bf16 %v1188_v40, %v1188_v40 }
 0x348   :  { %2992 = vmatpush1.bf16.msra.mxu0 %v4876_v49  ;;  %v4933_v49 = vld [vmem:[#allocation20 + $0x634] ss:$24 sps:$4 sm:$0xff]  }
 0x349   :  { %3002 = vmatprep.subr.bf16.mxu0 %v4881_v52  ;;  %v4939_v52 = vld [vmem:[#allocation20 + $0x694] ss:$24 sps:$4 sm:$0xff]  }
 0x34b   :  { %2994 = vmatmul.mubr.bf16.vlgmr.msra.gmra.mrb[8].mxu0 %v6230_v42 }
 0x34c   :  { %3003 = vmatpush1.bf16.msra.mxu0 %v4879_v53  ;;  %3034 = vmatprep.mubr.bf16.mxu0 %v6232_v54  ;;  %v4942_v53 = vld [vmem:[#allocation20 + $0x6c4] ss:$24 sps:$4 sm:$0xff]  }
 0x34d   :  { %3004 = vmatprep.subr.bf16.mxu0 %v4884_v57  ;;  %v4943_v57 = vld [vmem:[#allocation20 + $0x6f0] ss:$24 sps:$4 sm:$0xff]  }
 0x350   :  { %3005 = vmatpush1.bf16.msra.mxu0 %v4882_v59  ;;  %v4948_v59 = vld [vmem:[#allocation20 + $0x724] ss:$24 sps:$4 sm:$0xff]  }
 0x351   :  { %3006 = vmatprep.subr.bf16.mxu0 %v4887_v61  ;;  %v4952_v61 = vld [vmem:[#allocation20 + $0x750] ss:$24 sps:$4 sm:$0xff]  }
 0x354   :  { %3007 = vmatpush1.bf16.msra.mxu0 %v4885_v62  ;;  %v4960_v62 = vld [vmem:[#allocation20 + $0x784] ss:$24 sps:$4 sm:$0xff]  }
 0x355   :  { %3008 = vmatprep.subr.bf16.mxu0 %v4890_v1  ;;  %v4964_v1 = vld [vmem:[#allocation20 + $0x7b0] ss:$24 sps:$4 sm:$0xff]  }
 0x358   :  { %3009 = vmatpush1.bf16.msra.mxu0 %v4888_v2  ;;  %v4972_v2 = vld [vmem:[#allocation20 + $0x7e4] ss:$24 sps:$4 sm:$0xff]  }
 0x359   :  { %3010 = vmatprep.subr.bf16.mxu0 %v4893_v5  ;;  %v4976_v5 = vld [vmem:[#allocation20 + $0x810] ss:$24 sps:$4 sm:$0xff]  }
 0x35c   :  { %3011 = vmatpush1.bf16.msra.mxu0 %v4891_v6  ;;  %v4984_v6 = vld [vmem:[#allocation20 + $0x844] ss:$24 sps:$4 sm:$0xff]  }
 0x35d   :  { %3012 = vmatprep.subr.bf16.mxu0 %v4896_v9  ;;  %v4988_v9 = vld [vmem:[#allocation20 + $0x870] ss:$24 sps:$4 sm:$0xff]  }
 0x360   :  { %3013 = vmatpush1.bf16.msra.mxu0 %v4894_v10  ;;  %v4996_v10 = vld [vmem:[#allocation20 + $0x8a4] ss:$24 sps:$4 sm:$0xff]  }
 0x361   :  { %3014 = vmatprep.subr.bf16.mxu0 %v4899_v11  ;;  %v4994_v11 = vld [vmem:[#allocation20 + $0x8a0] ss:$24 sps:$4 sm:$0xff]  }
 0x364   :  { %3015 = vmatpush1.bf16.msra.mxu0 %v4897_v14  ;;  %v5008_v14 = vld [vmem:[#allocation20 + $0x14] ss:$24 sps:$4 sm:$0xff]  }
 0x365   :  { %3016 = vmatprep.subr.bf16.mxu0 %v4902_v15  ;;  %v6250_v15 = vpack.c.bf16 %v6236_v38, %v6236_v38 }
 0x368   :  { %3017 = vmatpush1.bf16.msra.mxu0 %v4900_v21  ;;  %v5012_v21 = vld [vmem:[#allocation20 + $0x40] ss:$24 sps:$4 sm:$0xff]  }
 0x369   :  { %3018 = vmatprep.subr.bf16.mxu0 %v4905_v22  ;;  %v5020_v22 = vld [vmem:[#allocation20 + $0x74] ss:$24 sps:$4 sm:$0xff]  }
 0x36c   :  { %3019 = vmatpush1.bf16.msra.mxu0 %v4903_v24  ;;  %v5026_v24 = vld [vmem:[#allocation20 + $0xa4] ss:$24 sps:$4 sm:$0xff]  }
 0x36d   :  { %3020 = vmatprep.subr.bf16.mxu0 %v4908_v25  ;;  %v5024_v25 = vld [vmem:[#allocation20 + $0xa0] ss:$24 sps:$4 sm:$0xff]  }
 0x370   :  { %3021 = vmatpush1.bf16.msra.mxu0 %v4906_v26  ;;  %v5032_v26 = vld [vmem:[#allocation20 + $0xd4] ss:$24 sps:$4 sm:$0xff]  }
 0x371   :  { %3022 = vmatprep.subr.bf16.mxu0 %v4911_v27  ;;  %v5030_v27 = vld [vmem:[#allocation20 + $0xd0] ss:$24 sps:$4 sm:$0xff]  }
 0x374   :  { %3023 = vmatpush1.bf16.msra.mxu0 %v4909_v28  ;;  %v698_v28 = vld [vmem:[#allocation15] sm:$0x3] }
 0x375   :  { %3024 = vmatprep.subr.bf16.mxu0 %v4914_v29  ;;  %v5038_v29 = vld [vmem:[#allocation20 + $0x104] ss:$24 sps:$4 sm:$0xff]  }
 0x378   :  { %3025 = vmatpush1.bf16.msra.mxu0 %v4912_v30  ;;  %v703_v30 = vrot.slane %v698_v28, %v6198_v18 }
 0x379   :  { %3026 = vmatprep.subr.bf16.mxu0 %v4917_v31  ;;  %v5036_v31 = vld [vmem:[#allocation20 + $0x100] ss:$24 sps:$4 sm:$0xff]  }
 0x37c   :  { %3027 = vmatpush1.bf16.msra.mxu0 %v4915_v32  ;;  %v707_v32 = vrot.slane %v698_v28, %v6201_v20  ;;  %v5107_v28 = vld [vmem:[#allocation20 + $0x1ec] ss:$24 sps:$4 sm:$0xff]  }
 0x37d   :  { %3028 = vmatprep.subr.bf16.mxu0 %v4920_v33  ;;  %v5044_v33 = vld [vmem:[#allocation20 + $0x134] ss:$24 sps:$4 sm:$0xff]  }
 0x380   :  { %3029 = vmatpush1.bf16.msra.mxu0 %v4918_v34 }
 0x381   :  { %3030 = vmatprep.subr.bf16.mxu0 %v4923_v35 }
 0x384   :  { %3031 = vmatpush1.bf16.msra.mxu0 %v4921_v36 }
 0x385   :  { %3032 = vmatprep.subr.bf16.mxu0 %v4926_v37 }
 0x388   :  { %3033 = vmatpush1.bf16.msra.mxu0 %v4924_v39  ;;  %v5042_v39 = vld [vmem:[#allocation20 + $0x130] ss:$24 sps:$4 sm:$0xff]  }
 0x389   :  { %3043 = vmatprep.subr.bf16.mxu0 %v4930_v41 }
 0x38b   :  { %3035 = vmatmul.mubr.bf16.vlgmr.msra.gmra.mrb[8].mxu0 %v6242_v45 }
 0x38c   :  { %3044 = vmatpush1.bf16.msra.mxu0 %v4928_v47  ;;  %3075 = vmatprep.mubr.bf16.mxu0 %v6244_v48  ;;  %v5050_v47 = vld [vmem:[#allocation20 + $0x164] ss:$24 sps:$4 sm:$0xff]  }
 0x38d   :  { %3045 = vmatprep.subr.bf16.mxu0 %v4933_v49 }
 0x390   :  { %3046 = vmatpush1.bf16.msra.mxu0 %v4931_v43 }
 0x391   :  { %3047 = vmatprep.subr.bf16.mxu0 %v4936_v50  ;;  %v5045_v50 = vld [vmem:[#allocation20 + $0x8] ss:$24 sps:$4 sm:$0xff]  }
 0x394   :  { %3048 = vmatpush1.bf16.msra.mxu0 %v4934_v51  ;;  %v5048_v51 = vld [vmem:[#allocation20 + $0x160] ss:$24 sps:$4 sm:$0xff]  }
 0x395   :  { %3049 = vmatprep.subr.bf16.mxu0 %v4939_v52 }
 0x398   :  { %3050 = vmatpush1.bf16.msra.mxu0 %v4937_v44  ;;  %v5053_v44 = vld [vmem:[#allocation20 + $0x3c] ss:$24 sps:$4 sm:$0xff]  }
 0x399   :  { %3051 = vmatprep.subr.bf16.mxu0 %v4942_v53  ;;  %v5056_v53 = vld [vmem:[#allocation20 + $0x194] ss:$24 sps:$4 sm:$0xff]  }
 0x39c   :  { %3052 = vmatpush1.bf16.msra.mxu0 %v4940_v55  ;;  %v5051_v55 = vld [vmem:[#allocation20 + $0x38] ss:$24 sps:$4 sm:$0xff]  }
 0x39d   :  { %3053 = vmatprep.subr.bf16.mxu0 %v4945_v56  ;;  %v5054_v56 = vld [vmem:[#allocation20 + $0x190] ss:$24 sps:$4 sm:$0xff]  }
 0x3a0   :  { %3054 = vmatpush1.bf16.msra.mxu0 %v4943_v57  ;;  %v5059_v57 = vld [vmem:[#allocation20 + $0x6c] ss:$24 sps:$4 sm:$0xff]  }
 0x3a1   :  { %3055 = vmatprep.subr.bf16.mxu0 %v4948_v59  ;;  %v5062_v59 = vld [vmem:[#allocation20 + $0x1c4] ss:$24 sps:$4 sm:$0xff]  }
 0x3a4   :  { %3056 = vmatpush1.bf16.msra.mxu0 %v4946_v60  ;;  %v5057_v60 = vld [vmem:[#allocation20 + $0x68] ss:$24 sps:$4 sm:$0xff]  }
 0x3a5   :  { %3057 = vmatprep.subr.bf16.mxu0 %v4954_v46  ;;  %v5060_v46 = vld [vmem:[#allocation20 + $0x1c0] ss:$24 sps:$4 sm:$0xff]  }
 0x3a8   :  { %3058 = vmatpush1.bf16.msra.mxu0 %v4952_v61  ;;  %v5065_v61 = vld [vmem:[#allocation20 + $0x9c] ss:$24 sps:$4 sm:$0xff]  }
 0x3a9   :  { %3059 = vmatprep.subr.bf16.mxu0 %v4960_v62  ;;  %v5068_v62 = vld [vmem:[#allocation20 + $0x1f4] ss:$24 sps:$4 sm:$0xff]  }
 0x3ac   :  { %3060 = vmatpush1.bf16.msra.mxu0 %v4958_v63  ;;  %v5063_v63 = vld [vmem:[#allocation20 + $0x98] ss:$24 sps:$4 sm:$0xff]  }
 0x3ad   :  { %3061 = vmatprep.subr.bf16.mxu0 %v4966_v0  ;;  %v5066_v0 = vld [vmem:[#allocation20 + $0x1f0] ss:$24 sps:$4 sm:$0xff]  }
 0x3b0   :  { %3062 = vmatpush1.bf16.msra.mxu0 %v4964_v1  ;;  %v5071_v1 = vld [vmem:[#allocation20 + $0xcc] ss:$24 sps:$4 sm:$0xff]  }
 0x3b1   :  { %3063 = vmatprep.subr.bf16.mxu0 %v4972_v2  ;;  %v5074_v2 = vld [vmem:[#allocation20 + $0x224] ss:$24 sps:$4 sm:$0xff]  }
 0x3b4   :  { %3064 = vmatpush1.bf16.msra.mxu0 %v4970_v3  ;;  %v5069_v3 = vld [vmem:[#allocation20 + $0xc8] ss:$24 sps:$4 sm:$0xff]  }
 0x3b5   :  { %3065 = vmatprep.subr.bf16.mxu0 %v4978_v4  ;;  %v5077_v4 = vld [vmem:[#allocation20 + $0xfc] ss:$24 sps:$4 sm:$0xff]  }
 0x3b8   :  { %3066 = vmatpush1.bf16.msra.mxu0 %v4976_v5  ;;  %v5080_v5 = vld [vmem:[#allocation20 + $0x254] ss:$24 sps:$4 sm:$0xff]  }
 0x3b9   :  { %3067 = vmatprep.subr.bf16.mxu0 %v4984_v6  ;;  %v5075_v6 = vld [vmem:[#allocation20 + $0xf8] ss:$24 sps:$4 sm:$0xff]  }
 0x3bc   :  { %3068 = vmatpush1.bf16.msra.mxu0 %v4982_v7  ;;  %v5078_v7 = vld [vmem:[#allocation20 + $0x250] ss:$24 sps:$4 sm:$0xff]  }
 0x3bd   :  { %3069 = vmatprep.subr.bf16.mxu0 %v4990_v8  ;;  %v5083_v8 = vld [vmem:[#allocation20 + $0x12c] ss:$24 sps:$4 sm:$0xff]  }
 0x3c0   :  { %3070 = vmatpush1.bf16.msra.mxu0 %v4988_v9  ;;  %v5086_v9 = vld [vmem:[#allocation20 + $0x284] ss:$24 sps:$4 sm:$0xff]  }
 0x3c1   :  { %3071 = vmatprep.subr.bf16.mxu0 %v4996_v10  ;;  %v5081_v10 = vld [vmem:[#allocation20 + $0x128] ss:$24 sps:$4 sm:$0xff]  }
 0x3c4   :  { %3072 = vmatpush1.bf16.msra.mxu0 %v4994_v11  ;;  %v5084_v11 = vld [vmem:[#allocation20 + $0x280] ss:$24 sps:$4 sm:$0xff]  }
 0x3c5   :  { %3073 = vmatprep.subr.bf16.mxu0 %v5002_v12  ;;  %v5089_v12 = vld [vmem:[#allocation20 + $0x15c] ss:$24 sps:$4 sm:$0xff]  }
 0x3c8   :  { %3074 = vmatpush1.bf16.msra.mxu0 %v5000_v13  ;;  %v5092_v13 = vld [vmem:[#allocation20 + $0x2b4] ss:$24 sps:$4 sm:$0xff]  }
 0x3c9   :  { %3207 = vmatprep.subr.bf16.mxu0 %v5008_v14  ;;  %v5087_v14 = vld [vmem:[#allocation20 + $0x158] ss:$24 sps:$4 sm:$0xff]  }
 0x3cb   :  { %3076 = vmatmul.mubr.bf16.vlgmr.msra.gmra.mrb[8].mxu0 %v6250_v15 }
 0x3cc   :  { %3208 = vmatpush1.bf16.msra.mxu0 %v5006_v16  ;;  %3239 = vmatprep.mubr.bf16.mxu0 %v6218_v58  ;;  %v5090_v16 = vld [vmem:[#allocation20 + $0x2b0] ss:$24 sps:$4 sm:$0xff]  }
 0x3cd   :  { %3209 = vmatprep.subr.bf16.mxu0 %v5014_v19  ;;  %v5095_v19 = vld [vmem:[#allocation20 + $0x18c] ss:$24 sps:$4 sm:$0xff]  }
 0x3d0   :  { %3210 = vmatpush1.bf16.msra.mxu0 %v5012_v21  ;;  %v5098_v21 = vld [vmem:[#allocation20 + $0x2e4] ss:$24 sps:$4 sm:$0xff]  }
 0x3d1   :  { %3211 = vmatprep.subr.bf16.mxu0 %v5020_v22  ;;  %v5093_v22 = vld [vmem:[#allocation20 + $0x188] ss:$24 sps:$4 sm:$0xff]  }
 0x3d4   :  { %3212 = vmatpush1.bf16.msra.mxu0 %v5018_v23  ;;  %v5096_v23 = vld [vmem:[#allocation20 + $0x2e0] ss:$24 sps:$4 sm:$0xff]  }
 0x3d5   :  { %3213 = vmatprep.subr.bf16.mxu0 %v5026_v24  ;;  %v5101_v24 = vld [vmem:[#allocation20 + $0x1bc] ss:$24 sps:$4 sm:$0xff]  }
 0x3d8   :  { %3214 = vmatpush1.bf16.msra.mxu0 %v5024_v25  ;;  %v5104_v25 = vld [vmem:[#allocation20 + $0x314] ss:$24 sps:$4 sm:$0xff]  }
 0x3d9   :  { %3215 = vmatprep.subr.bf16.mxu0 %v5032_v26  ;;  %v5099_v26 = vld [vmem:[#allocation20 + $0x1b8] ss:$24 sps:$4 sm:$0xff]  }
 0x3dc   :  { %3216 = vmatpush1.bf16.msra.mxu0 %v5030_v27  ;;  %v5102_v27 = vld [vmem:[#allocation20 + $0x310] ss:$24 sps:$4 sm:$0xff]  }
 0x3dd   :  { %3217 = vmatprep.subr.bf16.mxu0 %v5038_v29  ;;  %v5110_v29 = vld [vmem:[#allocation20 + $0x344] ss:$24 sps:$4 sm:$0xff]  }
 0x3de   :  { %v904_v34 = vpop.f32.mrb[4].mxu0 }
 0x3df   :  { %v905_v35 = vadd.f32 %v904_v34, %v703_v30  ;;  %v906_v36 = vpop.f32.mrb[5].mxu0  ;;  %v5105_v30 = vld [vmem:[#allocation20 + $0x1e8] ss:$24 sps:$4 sm:$0xff]   ;;  %v5111_v34 = vld [vmem:[#allocation20 + $0x218] ss:$24 sps:$4 sm:$0xff]  }
 0x3e0   :  { %v907_v37 = vadd.f32 %v906_v36, %v707_v32  ;;  %3218 = vmatpush1.bf16.msra.mxu0 %v5036_v31  ;;  %v908_v38 = vpop.f32.mrb[6].mxu0  ;;  %v5108_v31 = vld [vmem:[#allocation20 + $0x340] ss:$24 sps:$4 sm:$0xff]   ;;  %v5113_v32 = vld [vmem:[#allocation20 + $0x21c] ss:$24 sps:$4 sm:$0xff]  }
 0x3e1   :  { %v911_v40 = vmax.f32 %v905_v35, 0.0  ;;  %v909_v41 = vpop.f32.mrb[7].mxu0  ;;  %3219 = vmatprep.subr.bf16.mxu0 %v5044_v33  ;;  %v5116_v33 = vld [vmem:[#allocation20 + $0x374] ss:$24 sps:$4 sm:$0xff]   ;;  %v5114_v35 = vld [vmem:[#allocation20 + $0x370] ss:$24 sps:$4 sm:$0xff]  }
 0x3e2   :  { %v912_v49 = vmax.f32 %v907_v37, 0.0  ;;  %v5119_v36 = vld [vmem:[#allocation20 + $0x24c] ss:$24 sps:$4 sm:$0xff]   ;;  %v5117_v38 = vld [vmem:[#allocation20 + $0x248] ss:$24 sps:$4 sm:$0xff]  }
 0x3e3   :  { %v913_v52 = vpack.c.bf16 %v911_v40, %v911_v40  ;;  %v5122_v37 = vld [vmem:[#allocation20 + $0x3a4] ss:$24 sps:$4 sm:$0xff]   ;;  %v5128_v41 = vld [vmem:[#allocation20 + $0x3d4] ss:$24 sps:$4 sm:$0xff]  }
 0x3e4   :  { %v914_v43 = vpack.c.bf16 %v912_v49, %v912_v49  ;;  %3220 = vmatpush1.bf16.msra.mxu0 %v5042_v39  ;;  %v5120_v39 = vld [vmem:[#allocation20 + $0x3a0] ss:$24 sps:$4 sm:$0xff]   ;;  %v5125_v40 = vld [vmem:[#allocation20 + $0x27c] ss:$24 sps:$4 sm:$0xff]   ;;  %v5126_v49 = vld [vmem:[#allocation20 + $0x3d0] ss:$24 sps:$4 sm:$0xff]  }
 0x3e5   :  { %3221 = vmatprep.subr.bf16.mxu0 %v5050_v47  ;;  %v5123_v47 = vld [vmem:[#allocation20 + $0x278] ss:$24 sps:$4 sm:$0xff]  }
 0x3e6   :  { %1151 = vmatprep.mubr.bf16.mxu1 %v914_v43  ;;  %v5131_v43 = vld [vmem:[#allocation20 + $0x2ac] ss:$24 sps:$4 sm:$0xff]  }
 0x3e7   :  { %1152 = vmatmul.mubr.bf16.vlgmr.msra.gmra.mrb[4].mxu1 %v913_v52  ;;  %v5132_v52 = vld [vmem:[#allocation20 + $0x400] ss:$24 sps:$4 sm:$0xff]  }
 0x3e8   :  { %3085 = vmatpush1.bf16.msra.mxu1 %v5045_v50  ;;  %3222 = vmatpush1.bf16.msra.mxu0 %v5048_v51  ;;  %v5134_v50 = vld [vmem:[#allocation20 + $0x404] ss:$24 sps:$4 sm:$0xff]   ;;  %v5129_v51 = vld [vmem:[#allocation20 + $0x2a8] ss:$24 sps:$4 sm:$0xff]  }
 0x3e9   :  { %3086 = vmatprep.subr.bf16.mxu1 %v5053_v44  ;;  %3223 = vmatprep.subr.bf16.mxu0 %v5056_v53  ;;  %v5137_v44 = vld [vmem:[#allocation20 + $0x2dc] ss:$24 sps:$4 sm:$0xff]  }
 0x3ea   :  { %3116 = vmatprep.mubr.bf16.mxu1 %v6218_v58  ;;  %v5072_v58 = vld [vmem:[#allocation20 + $0x220] ss:$24 sps:$4 sm:$0xff]   ;;  %v5140_v53 = vld [vmem:[#allocation20 + $0x434] ss:$24 sps:$4 sm:$0xff]  }
 0x3ec   :  { %3087 = vmatpush1.bf16.msra.mxu1 %v5051_v55  ;;  %3224 = vmatpush1.bf16.msra.mxu0 %v5054_v56  ;;  %v5135_v55 = vld [vmem:[#allocation20 + $0x2d8] ss:$24 sps:$4 sm:$0xff]  }
 0x3ed   :  { %3088 = vmatprep.subr.bf16.mxu1 %v5059_v57  ;;  %3225 = vmatprep.subr.bf16.mxu0 %v5062_v59  ;;  %v5138_v56 = vld [vmem:[#allocation20 + $0x430] ss:$24 sps:$4 sm:$0xff]   ;;  %v5143_v57 = vld [vmem:[#allocation20 + $0x30c] ss:$24 sps:$4 sm:$0xff]  }
 0x3ee   :  { %v5146_v59 = vld [vmem:[#allocation20 + $0x464] ss:$24 sps:$4 sm:$0xff]  }
 0x3f0   :  { %3089 = vmatpush1.bf16.msra.mxu1 %v5057_v60  ;;  %3226 = vmatpush1.bf16.msra.mxu0 %v5060_v46  ;;  %v5141_v60 = vld [vmem:[#allocation20 + $0x308] ss:$24 sps:$4 sm:$0xff]  }
 0x3f1   :  { %3090 = vmatprep.subr.bf16.mxu1 %v5065_v61  ;;  %3227 = vmatprep.subr.bf16.mxu0 %v5068_v62  ;;  %v5144_v46 = vld [vmem:[#allocation20 + $0x460] ss:$24 sps:$4 sm:$0xff]   ;;  %v5149_v61 = vld [vmem:[#allocation20 + $0x33c] ss:$24 sps:$4 sm:$0xff]  }
 0x3f2   :  { %v5152_v62 = vld [vmem:[#allocation20 + $0x494] ss:$24 sps:$4 sm:$0xff]  }
 0x3f4   :  { %3091 = vmatpush1.bf16.msra.mxu1 %v5063_v63  ;;  %3228 = vmatpush1.bf16.msra.mxu0 %v5066_v0  ;;  %v5147_v63 = vld [vmem:[#allocation20 + $0x338] ss:$24 sps:$4 sm:$0xff]  }
 0x3f5   :  { %3092 = vmatprep.subr.bf16.mxu1 %v5071_v1  ;;  %3229 = vmatprep.subr.bf16.mxu0 %v5074_v2  ;;  %v5150_v0 = vld [vmem:[#allocation20 + $0x490] ss:$24 sps:$4 sm:$0xff]   ;;  %v5155_v1 = vld [vmem:[#allocation20 + $0x36c] ss:$24 sps:$4 sm:$0xff]  }
 0x3f6   :  { %v5158_v2 = vld [vmem:[#allocation20 + $0x4c4] ss:$24 sps:$4 sm:$0xff]  }
 0x3f8   :  { %3093 = vmatpush1.bf16.msra.mxu1 %v5069_v3  ;;  %3230 = vmatpush1.bf16.msra.mxu0 %v5072_v58  ;;  %v5153_v3 = vld [vmem:[#allocation20 + $0x368] ss:$24 sps:$4 sm:$0xff]  }
 0x3f9   :  { %3094 = vmatprep.subr.bf16.mxu1 %v5077_v4  ;;  %3231 = vmatprep.subr.bf16.mxu0 %v5080_v5  ;;  %v5156_v58 = vld [vmem:[#allocation20 + $0x4c0] ss:$24 sps:$4 sm:$0xff]   ;;  %v5161_v4 = vld [vmem:[#allocation20 + $0x39c] ss:$24 sps:$4 sm:$0xff]  }
 0x3fa   :  { %v5164_v5 = vld [vmem:[#allocation20 + $0x4f4] ss:$24 sps:$4 sm:$0xff]  }
 0x3fc   :  { %3095 = vmatpush1.bf16.msra.mxu1 %v5075_v6  ;;  %3232 = vmatpush1.bf16.msra.mxu0 %v5078_v7  ;;  %v5162_v6 = vld [vmem:[#allocation20 + $0x4f0] ss:$24 sps:$4 sm:$0xff]   ;;  %v5167_v7 = vld [vmem:[#allocation20 + $0x3cc] ss:$24 sps:$4 sm:$0xff]  }
 0x3fd   :  { %3096 = vmatprep.subr.bf16.mxu1 %v5083_v8  ;;  %3233 = vmatprep.subr.bf16.mxu0 %v5086_v9  ;;  %v5170_v8 = vld [vmem:[#allocation20 + $0x524] ss:$24 sps:$4 sm:$0xff]   ;;  %v5165_v9 = vld [vmem:[#allocation20 + $0x3c8] ss:$24 sps:$4 sm:$0xff]  }
 0x400   :  { %3097 = vmatpush1.bf16.msra.mxu1 %v5081_v10  ;;  %3234 = vmatpush1.bf16.msra.mxu0 %v5084_v11  ;;  %v5173_v10 = vld [vmem:[#allocation20 + $0x3fc] ss:$24 sps:$4 sm:$0xff]  }
 0x401   :  { %3098 = vmatprep.subr.bf16.mxu1 %v5089_v12  ;;  %3235 = vmatprep.subr.bf16.mxu0 %v5092_v13  ;;  %v5176_v11 = vld [vmem:[#allocation20 + $0x554] ss:$24 sps:$4 sm:$0xff]   ;;  %v5171_v12 = vld [vmem:[#allocation20 + $0x3f8] ss:$24 sps:$4 sm:$0xff]  }
 0x402   :  { %v5174_v13 = vld [vmem:[#allocation20 + $0x550] ss:$24 sps:$4 sm:$0xff]  }
 0x404   :  { %3099 = vmatpush1.bf16.msra.mxu1 %v5087_v14  ;;  %3236 = vmatpush1.bf16.msra.mxu0 %v5090_v16  ;;  %v5179_v14 = vld [vmem:[#allocation20 + $0x42c] ss:$24 sps:$4 sm:$0xff]  }
 0x405   :  { %3100 = vmatprep.subr.bf16.mxu1 %v5095_v19  ;;  %3237 = vmatprep.subr.bf16.mxu0 %v5098_v21  ;;  %v5182_v16 = vld [vmem:[#allocation20 + $0x584] ss:$24 sps:$4 sm:$0xff]   ;;  %v5177_v19 = vld [vmem:[#allocation20 + $0x428] ss:$24 sps:$4 sm:$0xff]  }
 0x406   :  { %v5180_v21 = vld [vmem:[#allocation20 + $0x580] ss:$24 sps:$4 sm:$0xff]  }
 0x408   :  { %3101 = vmatpush1.bf16.msra.mxu1 %v5093_v22  ;;  %3238 = vmatpush1.bf16.msra.mxu0 %v5096_v23  ;;  %v5185_v22 = vld [vmem:[#allocation20 + $0x45c] ss:$24 sps:$4 sm:$0xff]  }
 0x409   :  { %3102 = vmatprep.subr.bf16.mxu1 %v5101_v24  ;;  %3248 = vmatprep.subr.bf16.mxu0 %v5104_v25  ;;  %v5188_v23 = vld [vmem:[#allocation20 + $0x5b4] ss:$24 sps:$4 sm:$0xff]   ;;  %v5183_v24 = vld [vmem:[#allocation20 + $0x458] ss:$24 sps:$4 sm:$0xff]  }
 0x40a   :  { %v5186_v25 = vld [vmem:[#allocation20 + $0x5b0] ss:$24 sps:$4 sm:$0xff]  }
 0x40b   :  { %3240 = vmatmul.mubr.bf16.vlgmr.msra.gmra.mrb[12].mxu0 %v6230_v42 }
 0x40c   :  { %3103 = vmatpush1.bf16.msra.mxu1 %v5099_v26  ;;  %3249 = vmatpush1.bf16.msra.mxu0 %v5102_v27  ;;  %v5191_v26 = vld [vmem:[#allocation20 + $0x48c] ss:$24 sps:$4 sm:$0xff]  }
 0x40d   :  { %3104 = vmatprep.subr.bf16.mxu1 %v5107_v28  ;;  %3250 = vmatprep.subr.bf16.mxu0 %v5110_v29  ;;  %v5194_v27 = vld [vmem:[#allocation20 + $0x5e4] ss:$24 sps:$4 sm:$0xff]   ;;  %v5189_v28 = vld [vmem:[#allocation20 + $0x488] ss:$24 sps:$4 sm:$0xff]  }
 0x40e   :  { %3280 = vmatprep.mubr.bf16.mxu0 %v6232_v54  ;;  %v5192_v29 = vld [vmem:[#allocation20 + $0x5e0] ss:$24 sps:$4 sm:$0xff]  }
 0x410   :  { %3105 = vmatpush1.bf16.msra.mxu1 %v5105_v30  ;;  %3251 = vmatpush1.bf16.msra.mxu0 %v5108_v31  ;;  %v5197_v30 = vld [vmem:[#allocation20 + $0x4bc] ss:$24 sps:$4 sm:$0xff]  }
 0x411   :  { %3106 = vmatprep.subr.bf16.mxu1 %v5113_v32  ;;  %3252 = vmatprep.subr.bf16.mxu0 %v5116_v33  ;;  %v5200_v31 = vld [vmem:[#allocation20 + $0x614] ss:$24 sps:$4 sm:$0xff]   ;;  %v5195_v32 = vld [vmem:[#allocation20 + $0x4b8] ss:$24 sps:$4 sm:$0xff]  }
 0x412   :  { %v5198_v33 = vld [vmem:[#allocation20 + $0x610] ss:$24 sps:$4 sm:$0xff]  }
 0x414   :  { %3107 = vmatpush1.bf16.msra.mxu1 %v5111_v34  ;;  %3253 = vmatpush1.bf16.msra.mxu0 %v5114_v35  ;;  %v5203_v34 = vld [vmem:[#allocation20 + $0x4ec] ss:$24 sps:$4 sm:$0xff]  }
 0x415   :  { %3108 = vmatprep.subr.bf16.mxu1 %v5119_v36  ;;  %3254 = vmatprep.subr.bf16.mxu0 %v5122_v37  ;;  %v5206_v35 = vld [vmem:[#allocation20 + $0x644] ss:$24 sps:$4 sm:$0xff]   ;;  %v5201_v36 = vld [vmem:[#allocation20 + $0x4e8] ss:$24 sps:$4 sm:$0xff]  }
 0x416   :  { %v5204_v37 = vld [vmem:[#allocation20 + $0x640] ss:$24 sps:$4 sm:$0xff]  }
 0x418   :  { %3109 = vmatpush1.bf16.msra.mxu1 %v5117_v38  ;;  %3255 = vmatpush1.bf16.msra.mxu0 %v5120_v39  ;;  %v5209_v38 = vld [vmem:[#allocation20 + $0x51c] ss:$24 sps:$4 sm:$0xff]  }
 0x419   :  { %3110 = vmatprep.subr.bf16.mxu1 %v5125_v40  ;;  %3256 = vmatprep.subr.bf16.mxu0 %v5128_v41  ;;  %v5212_v39 = vld [vmem:[#allocation20 + $0x674] ss:$24 sps:$4 sm:$0xff]   ;;  %v5207_v40 = vld [vmem:[#allocation20 + $0x518] ss:$24 sps:$4 sm:$0xff]  }
 0x41a   :  { %v5210_v41 = vld [vmem:[#allocation20 + $0x670] ss:$24 sps:$4 sm:$0xff]  }
 0x41c   :  { %3111 = vmatpush1.bf16.msra.mxu1 %v5123_v47  ;;  %3257 = vmatpush1.bf16.msra.mxu0 %v5126_v49  ;;  %v5215_v47 = vld [vmem:[#allocation20 + $0x54c] ss:$24 sps:$4 sm:$0xff]  }
 0x41d   :  { %3112 = vmatprep.subr.bf16.mxu1 %v5131_v43  ;;  %3258 = vmatprep.subr.bf16.mxu0 %v5134_v50  ;;  %v5218_v49 = vld [vmem:[#allocation20 + $0x6a4] ss:$24 sps:$4 sm:$0xff]   ;;  %v5213_v43 = vld [vmem:[#allocation20 + $0x548] ss:$24 sps:$4 sm:$0xff]  }
 0x41e   :  { %v5216_v50 = vld [vmem:[#allocation20 + $0x6a0] ss:$24 sps:$4 sm:$0xff]  }
 0x420   :  { %3113 = vmatpush1.bf16.msra.mxu1 %v5129_v51  ;;  %3259 = vmatpush1.bf16.msra.mxu0 %v5132_v52  ;;  %v5221_v51 = vld [vmem:[#allocation20 + $0x57c] ss:$24 sps:$4 sm:$0xff]  }
 0x421   :  { %3114 = vmatprep.subr.bf16.mxu1 %v5137_v44  ;;  %3260 = vmatprep.subr.bf16.mxu0 %v5140_v53  ;;  %v5224_v52 = vld [vmem:[#allocation20 + $0x6d4] ss:$24 sps:$4 sm:$0xff]   ;;  %v5219_v44 = vld [vmem:[#allocation20 + $0x578] ss:$24 sps:$4 sm:$0xff]  }
 0x422   :  { %v5222_v53 = vld [vmem:[#allocation20 + $0x6d0] ss:$24 sps:$4 sm:$0xff]  }
 0x424   :  { %3115 = vmatpush1.bf16.msra.mxu1 %v5135_v55  ;;  %3261 = vmatpush1.bf16.msra.mxu0 %v5138_v56  ;;  %v5227_v55 = vld [vmem:[#allocation20 + $0x5ac] ss:$24 sps:$4 sm:$0xff]  }
 0x425   :  { %3125 = vmatprep.subr.bf16.mxu1 %v5143_v57  ;;  %3262 = vmatprep.subr.bf16.mxu0 %v5146_v59  ;;  %v5230_v56 = vld [vmem:[#allocation20 + $0x704] ss:$24 sps:$4 sm:$0xff]   ;;  %v5225_v57 = vld [vmem:[#allocation20 + $0x5a8] ss:$24 sps:$4 sm:$0xff]  }
 0x426   :  { %v5228_v59 = vld [vmem:[#allocation20 + $0x700] ss:$24 sps:$4 sm:$0xff]  }
 0x427   :  { %3117 = vmatmul.mubr.bf16.vlgmr.msra.gmra.mrb[8].mxu1 %v6230_v42  ;;  %v5159_v42 = vld [vmem:[#allocation20 + $0x398] ss:$24 sps:$4 sm:$0xff]  }
 0x428   :  { %3126 = vmatpush1.bf16.msra.mxu1 %v5141_v60  ;;  %3263 = vmatpush1.bf16.msra.mxu0 %v5144_v46  ;;  %v5233_v60 = vld [vmem:[#allocation20 + $0x5dc] ss:$24 sps:$4 sm:$0xff]  }
 0x429   :  { %3127 = vmatprep.subr.bf16.mxu1 %v5149_v61  ;;  %3264 = vmatprep.subr.bf16.mxu0 %v5152_v62  ;;  %v5236_v46 = vld [vmem:[#allocation20 + $0x734] ss:$24 sps:$4 sm:$0xff]   ;;  %v5231_v61 = vld [vmem:[#allocation20 + $0x5d8] ss:$24 sps:$4 sm:$0xff]  }
 0x42a   :  { %3157 = vmatprep.mubr.bf16.mxu1 %v6232_v54  ;;  %v5168_v54 = vld [vmem:[#allocation20 + $0x520] ss:$24 sps:$4 sm:$0xff]   ;;  %v5234_v62 = vld [vmem:[#allocation20 + $0x730] ss:$24 sps:$4 sm:$0xff]  }
 0x42c   :  { %3128 = vmatpush1.bf16.msra.mxu1 %v5147_v63  ;;  %3265 = vmatpush1.bf16.msra.mxu0 %v5150_v0  ;;  %v5239_v63 = vld [vmem:[#allocation20 + $0x60c] ss:$24 sps:$4 sm:$0xff]  }
 0x42d   :  { %3129 = vmatprep.subr.bf16.mxu1 %v5155_v1  ;;  %3266 = vmatprep.subr.bf16.mxu0 %v5158_v2  ;;  %v5242_v0 = vld [vmem:[#allocation20 + $0x764] ss:$24 sps:$4 sm:$0xff]   ;;  %v5237_v1 = vld [vmem:[#allocation20 + $0x608] ss:$24 sps:$4 sm:$0xff]  }
 0x42e   :  { %v5240_v2 = vld [vmem:[#allocation20 + $0x760] ss:$24 sps:$4 sm:$0xff]  }
 0x430   :  { %3130 = vmatpush1.bf16.msra.mxu1 %v5153_v3  ;;  %3267 = vmatpush1.bf16.msra.mxu0 %v5156_v58  ;;  %v5245_v3 = vld [vmem:[#allocation20 + $0x63c] ss:$24 sps:$4 sm:$0xff]  }
 0x431   :  { %3131 = vmatprep.subr.bf16.mxu1 %v5161_v4  ;;  %3268 = vmatprep.subr.bf16.mxu0 %v5164_v5  ;;  %v5248_v58 = vld [vmem:[#allocation20 + $0x794] ss:$24 sps:$4 sm:$0xff]   ;;  %v5243_v4 = vld [vmem:[#allocation20 + $0x638] ss:$24 sps:$4 sm:$0xff]  }
 0x432   :  { %v5246_v5 = vld [vmem:[#allocation20 + $0x790] ss:$24 sps:$4 sm:$0xff]  }
 0x434   :  { %3132 = vmatpush1.bf16.msra.mxu1 %v5159_v42  ;;  %3269 = vmatpush1.bf16.msra.mxu0 %v5162_v6  ;;  %v5251_v42 = vld [vmem:[#allocation20 + $0x66c] ss:$24 sps:$4 sm:$0xff]  }
 0x435   :  { %3133 = vmatprep.subr.bf16.mxu1 %v5167_v7  ;;  %3270 = vmatprep.subr.bf16.mxu0 %v5170_v8  ;;  %v5254_v6 = vld [vmem:[#allocation20 + $0x7c4] ss:$24 sps:$4 sm:$0xff]   ;;  %v5249_v7 = vld [vmem:[#allocation20 + $0x668] ss:$24 sps:$4 sm:$0xff]  }
 0x436   :  { %v5252_v8 = vld [vmem:[#allocation20 + $0x7c0] ss:$24 sps:$4 sm:$0xff]  }
 0x438   :  { %3134 = vmatpush1.bf16.msra.mxu1 %v5165_v9  ;;  %3271 = vmatpush1.bf16.msra.mxu0 %v5168_v54  ;;  %v5257_v9 = vld [vmem:[#allocation20 + $0x69c] ss:$24 sps:$4 sm:$0xff]  }
 0x439   :  { %3135 = vmatprep.subr.bf16.mxu1 %v5173_v10  ;;  %3272 = vmatprep.subr.bf16.mxu0 %v5176_v11  ;;  %v5260_v54 = vld [vmem:[#allocation20 + $0x7f4] ss:$24 sps:$4 sm:$0xff]   ;;  %v5258_v10 = vld [vmem:[#allocation20 + $0x7f0] ss:$24 sps:$4 sm:$0xff]  }
 0x43a   :  { %v5263_v11 = vld [vmem:[#allocation20 + $0x6cc] ss:$24 sps:$4 sm:$0xff]  }
 0x43c   :  { %3136 = vmatpush1.bf16.msra.mxu1 %v5171_v12  ;;  %3273 = vmatpush1.bf16.msra.mxu0 %v5174_v13  ;;  %v5266_v12 = vld [vmem:[#allocation20 + $0x824] ss:$24 sps:$4 sm:$0xff]   ;;  %v5261_v13 = vld [vmem:[#allocation20 + $0x6c8] ss:$24 sps:$4 sm:$0xff]  }
 0x43d   :  { %3137 = vmatprep.subr.bf16.mxu1 %v5179_v14  ;;  %3274 = vmatprep.subr.bf16.mxu0 %v5182_v16  ;;  %v5269_v14 = vld [vmem:[#allocation20 + $0x6fc] ss:$24 sps:$4 sm:$0xff]  }
 0x43e   :  { %v5272_v16 = vld [vmem:[#allocation20 + $0x854] ss:$24 sps:$4 sm:$0xff]  }
 0x440   :  { %3138 = vmatpush1.bf16.msra.mxu1 %v5177_v19  ;;  %3275 = vmatpush1.bf16.msra.mxu0 %v5180_v21  ;;  %v5267_v19 = vld [vmem:[#allocation20 + $0x6f8] ss:$24 sps:$4 sm:$0xff]  }
 0x441   :  { %3139 = vmatprep.subr.bf16.mxu1 %v5185_v22  ;;  %3276 = vmatprep.subr.bf16.mxu0 %v5188_v23  ;;  %v5270_v21 = vld [vmem:[#allocation20 + $0x850] ss:$24 sps:$4 sm:$0xff]   ;;  %v5275_v22 = vld [vmem:[#allocation20 + $0x72c] ss:$24 sps:$4 sm:$0xff]  }
 0x442   :  { %v5278_v23 = vld [vmem:[#allocation20 + $0x884] ss:$24 sps:$4 sm:$0xff]  }
 0x444   :  { %3140 = vmatpush1.bf16.msra.mxu1 %v5183_v24  ;;  %3277 = vmatpush1.bf16.msra.mxu0 %v5186_v25  ;;  %v5273_v24 = vld [vmem:[#allocation20 + $0x728] ss:$24 sps:$4 sm:$0xff]  }
 0x445   :  { %3141 = vmatprep.subr.bf16.mxu1 %v5191_v26  ;;  %3278 = vmatprep.subr.bf16.mxu0 %v5194_v27  ;;  %v5276_v25 = vld [vmem:[#allocation20 + $0x880] ss:$24 sps:$4 sm:$0xff]   ;;  %v5281_v26 = vld [vmem:[#allocation20 + $0x75c] ss:$24 sps:$4 sm:$0xff]  }
 0x446   :  { %v5284_v27 = vld [vmem:[#allocation20 + $0x8b4] ss:$24 sps:$4 sm:$0xff]  }
 0x448   :  { %3142 = vmatpush1.bf16.msra.mxu1 %v5189_v28  ;;  %3279 = vmatpush1.bf16.msra.mxu0 %v5192_v29  ;;  %v5279_v28 = vld [vmem:[#allocation20 + $0x758] ss:$24 sps:$4 sm:$0xff]  }
 0x449   :  { %3143 = vmatprep.subr.bf16.mxu1 %v5197_v30  ;;  %3289 = vmatprep.subr.bf16.mxu0 %v5200_v31  ;;  %v5282_v29 = vld [vmem:[#allocation20 + $0x8b0] ss:$24 sps:$4 sm:$0xff]   ;;  %v5287_v30 = vld [vmem:[#allocation20 + $0x78c] ss:$24 sps:$4 sm:$0xff]  }
 0x44a   :  { %v5290_v31 = vld [vmem:[#allocation20 + $0x8e4] ss:$24 sps:$4 sm:$0xff]  }
 0x44b   :  { %3281 = vmatmul.mubr.bf16.vlgmr.msra.gmra.mrb[12].mxu0 %v6242_v45 }
 0x44c   :  { %3144 = vmatpush1.bf16.msra.mxu1 %v5195_v32  ;;  %3290 = vmatpush1.bf16.msra.mxu0 %v5198_v33  ;;  %v5285_v32 = vld [vmem:[#allocation20 + $0x788] ss:$24 sps:$4 sm:$0xff]  }
 0x44d   :  { %3145 = vmatprep.subr.bf16.mxu1 %v5203_v34  ;;  %3291 = vmatprep.subr.bf16.mxu0 %v5206_v35  ;;  %v5288_v33 = vld [vmem:[#allocation20 + $0x8e0] ss:$24 sps:$4 sm:$0xff]   ;;  %v5293_v34 = vld [vmem:[#allocation20 + $0x7bc] ss:$24 sps:$4 sm:$0xff]  }
 0x44e   :  { %3321 = vmatprep.mubr.bf16.mxu0 %v6244_v48  ;;  %v5291_v35 = vld [vmem:[#allocation20 + $0x7b8] ss:$24 sps:$4 sm:$0xff]  }
 0x450   :  { %3146 = vmatpush1.bf16.msra.mxu1 %v5201_v36  ;;  %3292 = vmatpush1.bf16.msra.mxu0 %v5204_v37  ;;  %v5296_v36 = vld [vmem:[#allocation20 + $0x7ec] ss:$24 sps:$4 sm:$0xff]   ;;  %v5294_v37 = vld [vmem:[#allocation20 + $0x7e8] ss:$24 sps:$4 sm:$0xff]  }
 0x451   :  { %3147 = vmatprep.subr.bf16.mxu1 %v5209_v38  ;;  %3293 = vmatprep.subr.bf16.mxu0 %v5212_v39  ;;  %v5299_v38 = vld [vmem:[#allocation20 + $0x81c] ss:$24 sps:$4 sm:$0xff]   ;;  %v5297_v39 = vld [vmem:[#allocation20 + $0x818] ss:$24 sps:$4 sm:$0xff]  }
 0x454   :  { %3148 = vmatpush1.bf16.msra.mxu1 %v5207_v40  ;;  %3294 = vmatpush1.bf16.msra.mxu0 %v5210_v41  ;;  %v5302_v40 = vld [vmem:[#allocation20 + $0x84c] ss:$24 sps:$4 sm:$0xff]   ;;  %v5300_v41 = vld [vmem:[#allocation20 + $0x848] ss:$24 sps:$4 sm:$0xff]  }
 0x455   :  { %3149 = vmatprep.subr.bf16.mxu1 %v5215_v47  ;;  %3295 = vmatprep.subr.bf16.mxu0 %v5218_v49  ;;  %v5305_v47 = vld [vmem:[#allocation20 + $0x87c] ss:$24 sps:$4 sm:$0xff]   ;;  %v5303_v49 = vld [vmem:[#allocation20 + $0x878] ss:$24 sps:$4 sm:$0xff]  }
 0x458   :  { %3150 = vmatpush1.bf16.msra.mxu1 %v5213_v43  ;;  %3296 = vmatpush1.bf16.msra.mxu0 %v5216_v50  ;;  %v6266_v43 = vld [vmem:[#allocation21] sm:$0x3f] }
 0x459   :  { %3151 = vmatprep.subr.bf16.mxu1 %v5221_v51  ;;  %3297 = vmatprep.subr.bf16.mxu0 %v5224_v52  ;;  %v5308_v50 = vld [vmem:[#allocation20 + $0x8ac] ss:$24 sps:$4 sm:$0xff]   ;;  %v1498_v51 = vrot.slane %v6266_v43, %v6201_v20  ;;  %v5306_v52 = vld [vmem:[#allocation20 + $0x8a8] ss:$24 sps:$4 sm:$0xff]  }
 0x45c   :  { %3152 = vmatpush1.bf16.msra.mxu1 %v5219_v44  ;;  %3298 = vmatpush1.bf16.msra.mxu0 %v5222_v53  ;;  %v5311_v44 = vld [vmem:[#allocation20 + $0x8dc] ss:$24 sps:$4 sm:$0xff]  }
 0x45d   :  { %3153 = vmatprep.subr.bf16.mxu1 %v5227_v55  ;;  %3299 = vmatprep.subr.bf16.mxu0 %v5230_v56 }
 0x460   :  { %3154 = vmatpush1.bf16.msra.mxu1 %v5225_v57  ;;  %3300 = vmatpush1.bf16.msra.mxu0 %v5228_v59  ;;  %v5309_v59 = vld [vmem:[#allocation20 + $0x8d8] ss:$24 sps:$4 sm:$0xff]  }
 0x461   :  { %3155 = vmatprep.subr.bf16.mxu1 %v5233_v60  ;;  %3301 = vmatprep.subr.bf16.mxu0 %v5236_v46  ;;  %v5314_v46 = vld [vmem:[#allocation23 + $0x4] ss:$8 sps:$4 sm:$0xff]  }
 0x464   :  { %3156 = vmatpush1.bf16.msra.mxu1 %v5231_v61  ;;  %3302 = vmatpush1.bf16.msra.mxu0 %v5234_v62  ;;  %v5312_v61 = vld [vmem:[#allocation23] ss:$8 sps:$4 sm:$0xff]   ;;  %v5317_v62 = vld [vmem:[#allocation23 + $0x14] ss:$8 sps:$4 sm:$0xff]  }
 0x465   :  { %3166 = vmatprep.subr.bf16.mxu1 %v5239_v63  ;;  %3303 = vmatprep.subr.bf16.mxu0 %v5242_v0  ;;  %v5315_v63 = vld [vmem:[#allocation23 + $0x10] ss:$8 sps:$4 sm:$0xff]   ;;  %v5320_v0 = vld [vmem:[#allocation23 + $0x24] ss:$8 sps:$4 sm:$0xff]  }
 0x467   :  { %3158 = vmatmul.mubr.bf16.vlgmr.msra.gmra.mrb[8].mxu1 %v6242_v45  ;;  %v5255_v45 = vld [vmem:[#allocation20 + $0x698] ss:$24 sps:$4 sm:$0xff]  }
 0x468   :  { %3167 = vmatpush1.bf16.msra.mxu1 %v5237_v1  ;;  %3304 = vmatpush1.bf16.msra.mxu0 %v5240_v2  ;;  %v5318_v2 = vld [vmem:[#allocation23 + $0x20] ss:$8 sps:$4 sm:$0xff]  }
 0x469   :  { %3168 = vmatprep.subr.bf16.mxu1 %v5245_v3  ;;  %3305 = vmatprep.subr.bf16.mxu0 %v5248_v58  ;;  %v5323_v58 = vld [vmem:[#allocation23 + $0x34] ss:$8 sps:$4 sm:$0xff]  }
 0x46a   :  { %3198 = vmatprep.mubr.bf16.mxu1 %v6244_v48  ;;  %v5264_v48 = vld [vmem:[#allocation20 + $0x820] ss:$24 sps:$4 sm:$0xff]  }
 0x46c   :  { %3169 = vmatpush1.bf16.msra.mxu1 %v5243_v4  ;;  %3306 = vmatpush1.bf16.msra.mxu0 %v5246_v5  ;;  %v5321_v4 = vld [vmem:[#allocation23 + $0x30] ss:$8 sps:$4 sm:$0xff]   ;;  %v5326_v5 = vld [vmem:[#allocation23 + $0x44] ss:$8 sps:$4 sm:$0xff]  }
 0x46d   :  { %3170 = vmatprep.subr.bf16.mxu1 %v5251_v42  ;;  %3307 = vmatprep.subr.bf16.mxu0 %v5254_v6  ;;  %v5324_v42 = vld [vmem:[#allocation23 + $0x40] ss:$8 sps:$4 sm:$0xff]   ;;  %v947_v6 = vld [vmem:[#allocation18] sm:$0x3] }
 0x470   :  { %3171 = vmatpush1.bf16.msra.mxu1 %v5249_v7  ;;  %3308 = vmatpush1.bf16.msra.mxu0 %v5252_v8  ;;  %v4053_v7 = vld [vmem:[#allocation26] sm:$0x3]  ;;  %v952_v8 = vrot.slane %v947_v6, %v6198_v18 }
 0x471   :  { %3172 = vmatprep.subr.bf16.mxu1 %v5257_v9  ;;  %3309 = vmatprep.subr.bf16.mxu0 %v5260_v54  ;;  %v5327_v9 = vld [vmem:[#allocation23 + $0x50] ss:$8 sps:$4 sm:$0xff]   ;;  %v956_v54 = vrot.slane %v947_v6, %v6201_v20  ;;  %v5384_v6 = vld [vmem:[#allocation23 + $0x180] ss:$8 sps:$4 sm:$0xff]  }
 0x474   :  { %3173 = vmatpush1.bf16.msra.mxu1 %v5255_v45  ;;  %3310 = vmatpush1.bf16.msra.mxu0 %v5258_v10  ;;  %v4058_v45 = vrot.slane %v4053_v7, %v6198_v18  ;;  %v5332_v10 = vld [vmem:[#allocation23 + $0x64] ss:$8 sps:$4 sm:$0xff]  }
 0x475   :  { %3174 = vmatprep.subr.bf16.mxu1 %v5263_v11  ;;  %3311 = vmatprep.subr.bf16.mxu0 %v5266_v12  ;;  %v4062_v12 = vrot.slane %v4053_v7, %v6201_v20  ;;  %v5387_v7 = vld [vmem:[#allocation23 + $0x190] ss:$8 sps:$4 sm:$0xff]  }
 0x478   :  { %3175 = vmatpush1.bf16.msra.mxu1 %v5261_v13  ;;  %3312 = vmatpush1.bf16.msra.mxu0 %v5264_v48 }
 0x479   :  { %3176 = vmatprep.subr.bf16.mxu1 %v5269_v14  ;;  %3313 = vmatprep.subr.bf16.mxu0 %v5272_v16 }
 0x47c   :  { %3177 = vmatpush1.bf16.msra.mxu1 %v5267_v19  ;;  %3314 = vmatpush1.bf16.msra.mxu0 %v5270_v21  ;;  %v5330_v19 = vld [vmem:[#allocation23 + $0x60] ss:$8 sps:$4 sm:$0xff]  }
 0x47d   :  { %3178 = vmatprep.subr.bf16.mxu1 %v5275_v22  ;;  %3315 = vmatprep.subr.bf16.mxu0 %v5278_v23  ;;  %v5335_v23 = vld [vmem:[#allocation23 + $0x74] ss:$8 sps:$4 sm:$0xff]  }
 0x480   :  { %3179 = vmatpush1.bf16.msra.mxu1 %v5273_v24  ;;  %3316 = vmatpush1.bf16.msra.mxu0 %v5276_v25 }
 0x481   :  { %3180 = vmatprep.subr.bf16.mxu1 %v5281_v26  ;;  %3317 = vmatprep.subr.bf16.mxu0 %v5284_v27  ;;  %v5333_v26 = vld [vmem:[#allocation23 + $0x70] ss:$8 sps:$4 sm:$0xff]  }
 0x484   :  { %3181 = vmatpush1.bf16.msra.mxu1 %v5279_v28  ;;  %3318 = vmatpush1.bf16.msra.mxu0 %v5282_v29  ;;  %v5338_v29 = vld [vmem:[#allocation23 + $0x84] ss:$8 sps:$4 sm:$0xff]  }
 0x485   :  { %3182 = vmatprep.subr.bf16.mxu1 %v5287_v30  ;;  %3319 = vmatprep.subr.bf16.mxu0 %v5290_v31  ;;  %v5336_v30 = vld [vmem:[#allocation23 + $0x80] ss:$8 sps:$4 sm:$0xff]   ;;  %v5341_v31 = vld [vmem:[#allocation23 + $0x94] ss:$8 sps:$4 sm:$0xff]  }
 0x488   :  { %3183 = vmatpush1.bf16.msra.mxu1 %v5285_v32  ;;  %3320 = vmatpush1.bf16.msra.mxu0 %v5288_v33  ;;  %v5339_v32 = vld [vmem:[#allocation23 + $0x90] ss:$8 sps:$4 sm:$0xff]   ;;  %v5344_v33 = vld [vmem:[#allocation23 + $0xa4] ss:$8 sps:$4 sm:$0xff]  }
 0x489   :  { %3184 = vmatprep.subr.bf16.mxu1 %v5293_v34  ;;  %v5342_v34 = vld [vmem:[#allocation23 + $0xa0] ss:$8 sps:$4 sm:$0xff]  }
 0x48b   :  { %3322 = vmatmul.mubr.bf16.vlgmr.msra.gmra.mrb[12].mxu0 %v6250_v15 }
 0x48c   :  { %3185 = vmatpush1.bf16.msra.mxu1 %v5291_v35  ;;  %v5347_v35 = vld [vmem:[#allocation23 + $0xb4] ss:$8 sps:$4 sm:$0xff]  }
 0x48d   :  { %3186 = vmatprep.subr.bf16.mxu1 %v5296_v36  ;;  %v1494_v36 = vrot.slane %v6266_v43, %v6198_v18 }
 0x490   :  { %3187 = vmatpush1.bf16.msra.mxu1 %v5294_v37  ;;  %v5345_v37 = vld [vmem:[#allocation23 + $0xb0] ss:$8 sps:$4 sm:$0xff]  }
 0x491   :  { %3188 = vmatprep.subr.bf16.mxu1 %v5299_v38  ;;  %v5350_v38 = vld [vmem:[#allocation23 + $0xc4] ss:$8 sps:$4 sm:$0xff]  }
 0x494   :  { %3189 = vmatpush1.bf16.msra.mxu1 %v5297_v39 }
 0x495   :  { %3190 = vmatprep.subr.bf16.mxu1 %v5302_v40  ;;  %v5348_v40 = vld [vmem:[#allocation23 + $0xc0] ss:$8 sps:$4 sm:$0xff]  }
 0x498   :  { %3191 = vmatpush1.bf16.msra.mxu1 %v5300_v41  ;;  %v5353_v41 = vld [vmem:[#allocation23 + $0xd4] ss:$8 sps:$4 sm:$0xff]  }
 0x499   :  { %3192 = vmatprep.subr.bf16.mxu1 %v5305_v47  ;;  %v5351_v47 = vld [vmem:[#allocation23 + $0xd0] ss:$8 sps:$4 sm:$0xff]  }
 0x49c   :  { %3193 = vmatpush1.bf16.msra.mxu1 %v5303_v49  ;;  %v5356_v49 = vld [vmem:[#allocation23 + $0xe4] ss:$8 sps:$4 sm:$0xff]  }
 0x49d   :  { %3194 = vmatprep.subr.bf16.mxu1 %v5308_v50  ;;  %v5354_v50 = vld [vmem:[#allocation23 + $0xe0] ss:$8 sps:$4 sm:$0xff]  }
 0x49e   :  { %v6270_v53 = vpop.f32.mrb[8].mxu0 }
 0x49f   :  { %v3079_v55 = vpop.f32.mrb[9].mxu0  ;;  %v4646_v39 = vadd.f32 %v6270_v53, %v1494_v36  ;;  %v5360_v53 = vld [vmem:[#allocation23 + $0x100] ss:$8 sps:$4 sm:$0xff]  }
 0x4a0   :  { %v4647_v56 = vadd.f32 %v3079_v55, %v1498_v51  ;;  %v3081_v57 = vpop.f32.mrb[10].mxu0  ;;  %3195 = vmatpush1.bf16.msra.mxu1 %v5306_v52  ;;  %v5359_v51 = vld [vmem:[#allocation23 + $0xf4] ss:$8 sps:$4 sm:$0xff]   ;;  %v5357_v52 = vld [vmem:[#allocation23 + $0xf0] ss:$8 sps:$4 sm:$0xff]  }
 0x4a1   :  { %v3082_v60 = vpop.f32.mrb[11].mxu0  ;;  %3196 = vmatprep.subr.bf16.mxu1 %v5311_v44  ;;  %v5362_v44 = vld [vmem:[#allocation23 + $0x104] ss:$8 sps:$4 sm:$0xff]   ;;  %v5365_v57 = vld [vmem:[#allocation23 + $0x114] ss:$8 sps:$4 sm:$0xff]  }
 0x4a2   :  { %5456 = vtanh.f32 %v4647_v56  ;;  %v5368_v60 = vld [vmem:[#allocation23 + $0x124] ss:$8 sps:$4 sm:$0xff]  }
 0x4a3   :  { %5458 = vtanh.f32 %v4646_v39 }
 0x4a4   :  { %3197 = vmatpush1.bf16.msra.mxu1 %v5309_v59  ;;  %v5363_v59 = vld [vmem:[#allocation23 + $0x110] ss:$8 sps:$4 sm:$0xff]  }
 0x4a5   :  { %3930 = vmatprep.subr.bf16.mxu1 %v5314_v46  ;;  %v5366_v46 = vld [vmem:[#allocation23 + $0x120] ss:$8 sps:$4 sm:$0xff]  }
 0x4a7   :  { %3199 = vmatmul.mubr.bf16.vlgmr.msra.gmra.mrb[8].mxu1 %v6250_v15  ;;  %v5329_v15 = vld [vmem:[#allocation23 + $0x54] ss:$8 sps:$4 sm:$0xff]  }
 0x4a8   :  { %3931 = vmatpush1.bf16.msra.mxu1 %v5312_v61  ;;  %v5371_v61 = vld [vmem:[#allocation23 + $0x134] ss:$8 sps:$4 sm:$0xff]  }
 0x4a9   :  { %3932 = vmatprep.subr.bf16.mxu1 %v5317_v62  ;;  %v5369_v62 = vld [vmem:[#allocation23 + $0x130] ss:$8 sps:$4 sm:$0xff]  }
 0x4ac   :  { %v5457_v1 = vpop.eup %5456  ;;  %3933 = vmatpush1.bf16.msra.mxu1 %v5315_v63  ;;  %v5374_v63 = vld [vmem:[#allocation23 + $0x144] ss:$8 sps:$4 sm:$0xff]  }
 0x4ad   :  { %v3337_v3 = vpack.c.bf16 %v5457_v1, %v5457_v1  ;;  %3934 = vmatprep.subr.bf16.mxu1 %v5320_v0  ;;  %v5459_v55 = vpop.eup %5458  ;;  %v5372_v0 = vld [vmem:[#allocation23 + $0x140] ss:$8 sps:$4 sm:$0xff]   ;;  %v5377_v1 = vld [vmem:[#allocation23 + $0x154] ss:$8 sps:$4 sm:$0xff]  }
 0x4ae   :  { %v3336_v56 = vpack.c.bf16 %v5459_v55, %v5459_v55  ;;  %v5416_v55 = vld [vmem:[#allocation23 + $0x224] ss:$8 sps:$4 sm:$0xff]  }
 0x4af   :  { %3962 = vmatprep.mubr.bf16.mxu1 %v3337_v3  ;;  %v5380_v3 = vld [vmem:[#allocation23 + $0x164] ss:$8 sps:$4 sm:$0xff]  }
 0x4b0   :  { %3935 = vmatpush1.bf16.msra.mxu1 %v5318_v2  ;;  %v5375_v2 = vld [vmem:[#allocation23 + $0x150] ss:$8 sps:$4 sm:$0xff]  }
 0x4b1   :  { %3936 = vmatprep.subr.bf16.mxu1 %v5323_v58  ;;  %v5378_v58 = vld [vmem:[#allocation23 + $0x160] ss:$8 sps:$4 sm:$0xff]  }
 0x4b4   :  { %3937 = vmatpush1.bf16.msra.mxu1 %v5321_v4  ;;  %v5383_v4 = vld [vmem:[#allocation23 + $0x174] ss:$8 sps:$4 sm:$0xff]  }
 0x4b5   :  { %3938 = vmatprep.subr.bf16.mxu1 %v5326_v5  ;;  %v5381_v5 = vld [vmem:[#allocation23 + $0x170] ss:$8 sps:$4 sm:$0xff]  }
 0x4b8   :  { %3939 = vmatpush1.bf16.msra.mxu1 %v5324_v42  ;;  %v5386_v42 = vld [vmem:[#allocation23 + $0x184] ss:$8 sps:$4 sm:$0xff]  }
 0x4b9   :  { %3940 = vmatprep.subr.bf16.mxu1 %v5329_v15  ;;  %v5389_v15 = vld [vmem:[#allocation23 + $0x194] ss:$8 sps:$4 sm:$0xff]  }
 0x4ba   :  { %v1153_v11 = vpop.f32.mrb[4].mxu1 }
 0x4bb   :  { %v1154_v13 = vadd.f32 %v1153_v11, %v952_v8  ;;  %v1155_v48 = vpop.f32.mrb[5].mxu1  ;;  %v5392_v8 = vld [vmem:[#allocation23 + $0x1a4] ss:$8 sps:$4 sm:$0xff]   ;;  %v5396_v11 = vld [vmem:[#allocation23 + $0x1c0] ss:$8 sps:$4 sm:$0xff]  }
 0x4bc   :  { %v1156_v14 = vadd.f32 %v1155_v48, %v956_v54  ;;  %3941 = vmatpush1.bf16.msra.mxu1 %v5327_v9  ;;  %v1157_v16 = vpop.f32.mrb[6].mxu1  ;;  %v5390_v9 = vld [vmem:[#allocation23 + $0x1a0] ss:$8 sps:$4 sm:$0xff]   ;;  %v5395_v54 = vld [vmem:[#allocation23 + $0x1b4] ss:$8 sps:$4 sm:$0xff]  }
 0x4bd   :  { %v4065_v21 = vmul.f32 %v4058_v45, %v1154_v13  ;;  %v1158_v22 = vpop.f32.mrb[7].mxu1  ;;  %3942 = vmatprep.subr.bf16.mxu1 %v5332_v10  ;;  %v5393_v45 = vld [vmem:[#allocation23 + $0x1b0] ss:$8 sps:$4 sm:$0xff]   ;;  %v5398_v10 = vld [vmem:[#allocation23 + $0x1c4] ss:$8 sps:$4 sm:$0xff]  }
 0x4be   :  { %v4066_v24 = vmul.f32 %v4062_v12, %v1156_v14  ;;  %v5401_v12 = vld [vmem:[#allocation23 + $0x1d4] ss:$8 sps:$4 sm:$0xff]   ;;  %v5399_v13 = vld [vmem:[#allocation23 + $0x1d0] ss:$8 sps:$4 sm:$0xff]   ;;  %v5404_v48 = vld [vmem:[#allocation23 + $0x1e4] ss:$8 sps:$4 sm:$0xff]  }
 0x4bf   :  { %v4068_v25 = vsel %vm4067_vm0, %v4065_v21, 0.0  ;;  %v5402_v14 = vld [vmem:[#allocation23 + $0x1e0] ss:$8 sps:$4 sm:$0xff]   ;;  %v5407_v16 = vld [vmem:[#allocation23 + $0x1f4] ss:$8 sps:$4 sm:$0xff]  }
 0x4c0   :  { %3943 = vmatpush1.bf16.msra.mxu1 %v5330_v19  ;;  %v4069_v27 = vsel %vm4067_vm0, %v4066_v24, 0.0  ;;  %v5405_v19 = vld [vmem:[#allocation23 + $0x1f0] ss:$8 sps:$4 sm:$0xff]   ;;  %v5410_v21 = vld [vmem:[#allocation23 + $0x204] ss:$8 sps:$4 sm:$0xff]  }
 0x4c1   :  { %3944 = vmatprep.subr.bf16.mxu1 %v5335_v23  ;;  %v4070_v28 = vadd.f32 %v4069_v27, %v4068_v25  ;;  %v1501_v27 = vsub.s32 2, %v6195_v17 }
 0x4c3   :  { %4071 = vadd.xlane.f32.xlu0 %v4070_v28 }
 0x4c4   :  { %3945 = vmatpush1.bf16.msra.mxu1 %v5333_v26  ;;  %v1513_v26 = vsub.s32 5, %v6195_v17 }
 0x4c5   :  { %3946 = vmatprep.subr.bf16.mxu1 %v5338_v29  ;;  %v1505_v29 = vsub.s32 3, %v6195_v17 }
 0x4c6   :  { %v1514_v28 = vrot.slane %v6266_v43, %v1513_v26 }
 0x4c8   :  { %3947 = vmatpush1.bf16.msra.mxu1 %v5336_v30  ;;  %v1502_v30 = vrot.slane %v6266_v43, %v1501_v27 }
 0x4c9   :  { %3948 = vmatprep.subr.bf16.mxu1 %v5341_v31 }
 0x4cc   :  { %3949 = vmatpush1.bf16.msra.mxu1 %v5339_v32  ;;  %v1506_v32 = vrot.slane %v6266_v43, %v1505_v29 }
 0x4cd   :  { %3950 = vmatprep.subr.bf16.mxu1 %v5344_v33 }
 0x4d0   :  { %3951 = vmatpush1.bf16.msra.mxu1 %v5342_v34 }
 0x4d1   :  { %3952 = vmatprep.subr.bf16.mxu1 %v5347_v35 }
 0x4d4   :  { %3953 = vmatpush1.bf16.msra.mxu1 %v5345_v37 }
 0x4d5   :  { %3954 = vmatprep.subr.bf16.mxu1 %v5350_v38 }
 0x4d8   :  { %3955 = vmatpush1.bf16.msra.mxu1 %v5348_v40 }
 0x4d9   :  { %3956 = vmatprep.subr.bf16.mxu1 %v5353_v41 }
 0x4dc   :  { %3957 = vmatpush1.bf16.msra.mxu1 %v5351_v47 }
 0x4dd   :  { %3958 = vmatprep.subr.bf16.mxu1 %v5356_v49  ;;  %v5408_v49 = vld [vmem:[#allocation23 + $0x200] ss:$8 sps:$4 sm:$0xff]  }
 0x4e0   :  { %3959 = vmatpush1.bf16.msra.mxu1 %v5354_v50 }
 0x4e1   :  { %3960 = vmatprep.subr.bf16.mxu1 %v5359_v51  ;;  %v5413_v51 = vld [vmem:[#allocation23 + $0x214] ss:$8 sps:$4 sm:$0xff]  }
 0x4e4   :  { %3961 = vmatpush1.bf16.msra.mxu1 %v5357_v52 }
 0x4e5   :  { %3971 = vmatprep.subr.bf16.mxu1 %v5362_v44  ;;  %v5411_v44 = vld [vmem:[#allocation23 + $0x210] ss:$8 sps:$4 sm:$0xff]  }
 0x4e7   :  { %3963 = vmatmul.mubr.bf16.vlgmr.msra.gmra.mrb[12].mxu1 %v3336_v56  ;;  %v5419_v56 = vld [vmem:[#allocation23 + $0x234] ss:$8 sps:$4 sm:$0xff]  }
 0x4e8   :  { %3972 = vmatpush1.bf16.msra.mxu1 %v5360_v53  ;;  %v5414_v53 = vld [vmem:[#allocation23 + $0x220] ss:$8 sps:$4 sm:$0xff]  }
 0x4e9   :  { %3973 = vmatprep.subr.bf16.mxu1 %v5365_v57  ;;  %v5417_v57 = vld [vmem:[#allocation23 + $0x230] ss:$8 sps:$4 sm:$0xff]  }
 0x4ec   :  { %3974 = vmatpush1.bf16.msra.mxu1 %v5363_v59  ;;  %v5422_v59 = vld [vmem:[#allocation23 + $0x244] ss:$8 sps:$4 sm:$0xff]  }
 0x4ed   :  { %3975 = vmatprep.subr.bf16.mxu1 %v5368_v60  ;;  %v5420_v60 = vld [vmem:[#allocation23 + $0x240] ss:$8 sps:$4 sm:$0xff]  }
 0x4f0   :  { %3976 = vmatpush1.bf16.msra.mxu1 %v5366_v46  ;;  %v5425_v46 = vld [vmem:[#allocation23 + $0x254] ss:$8 sps:$4 sm:$0xff]  }
 0x4f1   :  { %3977 = vmatprep.subr.bf16.mxu1 %v5371_v61  ;;  %v5423_v61 = vld [vmem:[#allocation23 + $0x250] ss:$8 sps:$4 sm:$0xff]  }
 0x4f4   :  { %3978 = vmatpush1.bf16.msra.mxu1 %v5369_v62  ;;  %v5428_v62 = vld [vmem:[#allocation23 + $0x264] ss:$8 sps:$4 sm:$0xff]  }
 0x4f5   :  { %3979 = vmatprep.subr.bf16.mxu1 %v5374_v63  ;;  %v5426_v63 = vld [vmem:[#allocation23 + $0x260] ss:$8 sps:$4 sm:$0xff]  }
 0x4f8   :  { %3980 = vmatpush1.bf16.msra.mxu1 %v5372_v0  ;;  %v5431_v0 = vld [vmem:[#allocation23 + $0x274] ss:$8 sps:$4 sm:$0xff]  }
 0x4f9   :  { %3981 = vmatprep.subr.bf16.mxu1 %v5377_v1  ;;  %v5429_v1 = vld [vmem:[#allocation23 + $0x270] ss:$8 sps:$4 sm:$0xff]  }
 0x4fc   :  { %3982 = vmatpush1.bf16.msra.mxu1 %v5375_v2  ;;  %v5434_v2 = vld [vmem:[#allocation23 + $0x284] ss:$8 sps:$4 sm:$0xff]  }
 0x4fd   :  { %3983 = vmatprep.subr.bf16.mxu1 %v5380_v3  ;;  %v5432_v3 = vld [vmem:[#allocation23 + $0x280] ss:$8 sps:$4 sm:$0xff]  }
 0x500   :  { %3984 = vmatpush1.bf16.msra.mxu1 %v5378_v58  ;;  %v5437_v58 = vld [vmem:[#allocation23 + $0x294] ss:$8 sps:$4 sm:$0xff]  }
 0x501   :  { %3985 = vmatprep.subr.bf16.mxu1 %v5383_v4  ;;  %v5435_v4 = vld [vmem:[#allocation23 + $0x290] ss:$8 sps:$4 sm:$0xff]  }
 0x504   :  { %3986 = vmatpush1.bf16.msra.mxu1 %v5381_v5  ;;  %v5440_v5 = vld [vmem:[#allocation23 + $0x2a4] ss:$8 sps:$4 sm:$0xff]  }
 0x505   :  { %3987 = vmatprep.subr.bf16.mxu1 %v5386_v42  ;;  %v1509_v42 = vsub.s32 4, %v6195_v17  ;;  %v5452_v17 = vld [vmem:[#allocation23 + $0x2e4] ss:$8 sps:$4 sm:$0xff]  }
 0x508   :  { %3988 = vmatpush1.bf16.msra.mxu1 %v5384_v6  ;;  %v5438_v6 = vld [vmem:[#allocation23 + $0x2a0] ss:$8 sps:$4 sm:$0xff]  }
 0x509   :  { %3989 = vmatprep.subr.bf16.mxu1 %v5389_v15  ;;  %v5443_v15 = vld [vmem:[#allocation23 + $0x2b4] ss:$8 sps:$4 sm:$0xff]  }
 0x50c   :  { %3990 = vmatpush1.bf16.msra.mxu1 %v5387_v7  ;;  %v1510_v7 = vrot.slane %v6266_v43, %v1509_v42  ;;  %v5453_v43 = vld [vmem:[#allocation23 + $0x2f0] ss:$8 sps:$4 sm:$0xff]  }
 0x50d   :  { %3991 = vmatprep.subr.bf16.mxu1 %v5392_v8  ;;  %v5441_v8 = vld [vmem:[#allocation23 + $0x2b0] ss:$8 sps:$4 sm:$0xff]  }
 0x510   :  { %3992 = vmatpush1.bf16.msra.mxu1 %v5390_v9  ;;  %v5446_v9 = vld [vmem:[#allocation23 + $0x2c4] ss:$8 sps:$4 sm:$0xff]  }
 0x511   :  { %3993 = vmatprep.subr.bf16.mxu1 %v5395_v54 }
 0x514   :  { %3994 = vmatpush1.bf16.msra.mxu1 %v5393_v45  ;;  %v5444_v45 = vld [vmem:[#allocation23 + $0x2c0] ss:$8 sps:$4 sm:$0xff]  }
 0x515   :  { %3995 = vmatprep.subr.bf16.mxu1 %v5398_v10  ;;  %v5449_v10 = vld [vmem:[#allocation23 + $0x2d4] ss:$8 sps:$4 sm:$0xff]  }
 0x518   :  { %3996 = vmatpush1.bf16.msra.mxu1 %v5396_v11  ;;  %v5447_v11 = vld [vmem:[#allocation23 + $0x2d0] ss:$8 sps:$4 sm:$0xff]  }
 0x519   :  { %3997 = vmatprep.subr.bf16.mxu1 %v5401_v12  ;;  %v5450_v12 = vld [vmem:[#allocation23 + $0x2e0] ss:$8 sps:$4 sm:$0xff]  }
 0x51c   :  { %3998 = vmatpush1.bf16.msra.mxu1 %v5399_v13  ;;  %v5455_v13 = vld [vmem:[#allocation23 + $0x2f4] ss:$8 sps:$4 sm:$0xff]  }
 0x51d   :  { %3999 = vmatprep.subr.bf16.mxu1 %v5404_v48 }
 0x520   :  { %4000 = vmatpush1.bf16.msra.mxu1 %v5402_v14 }
 0x521   :  { %4001 = vmatprep.subr.bf16.mxu1 %v5407_v16  ;;  %v3438_v16 = vld [vmem:[#allocation24] sm:$0x3] }
 0x524   :  { %4002 = vmatpush1.bf16.msra.mxu1 %v5405_v19  ;;  %v4073_v19 = vld [vmem:[#allocation27] sm:$0x3] }
 0x525   :  { %4012 = vmatprep.subr.bf16.mxu1 %v5410_v21  ;;  %v3443_v21 = vrot.slane %v3438_v16, %v6198_v18 }
 0x55e   :  { %v6282_v22 = vpop.f32.mrb[12].mxu0 }
 0x55f   :  { %v3325_v23 = vpop.f32.mrb[13].mxu0  ;;  %v4650_v54 = vadd.f32 %v6282_v22, %v1510_v7  ;;  %v3447_v22 = vrot.slane %v3438_v16, %v6201_v20 }
 0x560   :  { %v3327_v24 = vpop.f32.mrb[14].mxu0  ;;  %v4651_v31 = vadd.f32 %v3325_v23, %v1514_v28  ;;  %v4078_v23 = vrot.slane %v4073_v19, %v6198_v18 }
 0x561   :  { %v3328_v25 = vpop.f32.mrb[15].mxu0 }
 0x562   :  { %5460 = vtanh.f32 %v4651_v31  ;;  %v4082_v25 = vrot.slane %v4073_v19, %v6201_v20  ;;  %v4103_v20 = vld [vmem:[%s6347_s24] sm:$0x3] }
 0x56c   :  { %v5461_v39 = vpop.eup %5460 }
 0x56d   :  { %v3341_v52 = vpack.c.bf16 %v5461_v39, %v5461_v39 }
 0x57a   :  { %v3200_v33 = vpop.f32.mrb[8].mxu1 }
 0x57b   :  { %v4648_v34 = vadd.f32 %v3200_v33, %v1502_v30  ;;  %v3202_v35 = vpop.f32.mrb[9].mxu1 }
 0x57c   :  { %v4649_v36 = vadd.f32 %v3202_v35, %v1506_v32  ;;  %v3204_v37 = vpop.f32.mrb[10].mxu1 }
 0x57d   :  { %5462 = vtanh.f32 %v4648_v34  ;;  %v3205_v38 = vpop.f32.mrb[11].mxu1  ;;  %v4645_v37 = vld [vmem:[#allocation2] ss:$0 sm:$0xff] }
 0x57e   :  { %5464 = vtanh.f32 %v4649_v36  ;;  %v4072_v36 = vpop.xlane.xlu0 %4071 }
 0x57f   :  { %5466 = vtanh.f32 %v4650_v54 }
 0x587   :  { %v5463_v40 = vpop.eup %5462 }
 0x588   :  { %v5465_v41 = vpop.eup %5464  ;;  %v3338_v50 = vpack.c.bf16 %v5463_v40, %v5463_v40 }
 0x589   :  { %v3339_v47 = vpack.c.bf16 %v5465_v41, %v5465_v41  ;;  %v5467_v48 = vpop.eup %5466 }
 0x58a   :  { %v3340_v14 = vpack.c.bf16 %v5467_v48, %v5467_v48 }
 0x58b   :  { %4003 = vmatprep.mubr.bf16.mxu1 %v3339_v47 }
 0x58c   :  { %4004 = vmatmul.mubr.bf16.vlgmr.msra.gmra.mrb[12].mxu1 %v3338_v50 }
 0x58d   :  { %4013 = vmatpush1.bf16.msra.mxu1 %v5408_v49  ;;  %4044 = vmatprep.mubr.bf16.mxu1 %v3341_v52 }
 0x58e   :  { %4014 = vmatprep.subr.bf16.mxu1 %v5413_v51 }
 0x591   :  { %4015 = vmatpush1.bf16.msra.mxu1 %v5411_v44 }
 0x592   :  { %4016 = vmatprep.subr.bf16.mxu1 %v5416_v55 }
 0x595   :  { %4017 = vmatpush1.bf16.msra.mxu1 %v5414_v53 }
 0x596   :  { %4018 = vmatprep.subr.bf16.mxu1 %v5419_v56 }
 0x599   :  { %4019 = vmatpush1.bf16.msra.mxu1 %v5417_v57 }
 0x59a   :  { %4020 = vmatprep.subr.bf16.mxu1 %v5422_v59 }
 0x59d   :  { %4021 = vmatpush1.bf16.msra.mxu1 %v5420_v60 }
 0x59e   :  { %4022 = vmatprep.subr.bf16.mxu1 %v5425_v46 }
 0x5a1   :  { %4023 = vmatpush1.bf16.msra.mxu1 %v5423_v61 }
 0x5a2   :  { %4024 = vmatprep.subr.bf16.mxu1 %v5428_v62 }
 0x5a5   :  { %4025 = vmatpush1.bf16.msra.mxu1 %v5426_v63 }
 0x5a6   :  { %4026 = vmatprep.subr.bf16.mxu1 %v5431_v0 }
 0x5a9   :  { %4027 = vmatpush1.bf16.msra.mxu1 %v5429_v1 }
 0x5aa   :  { %4028 = vmatprep.subr.bf16.mxu1 %v5434_v2 }
 0x5ad   :  { %4029 = vmatpush1.bf16.msra.mxu1 %v5432_v3 }
 0x5ae   :  { %4030 = vmatprep.subr.bf16.mxu1 %v5437_v58 }
 0x5b1   :  { %4031 = vmatpush1.bf16.msra.mxu1 %v5435_v4 }
 0x5b2   :  { %4032 = vmatprep.subr.bf16.mxu1 %v5440_v5 }
 0x5b5   :  { %4033 = vmatpush1.bf16.msra.mxu1 %v5438_v6 }
 0x5b6   :  { %4034 = vmatprep.subr.bf16.mxu1 %v5443_v15 }
 0x5b9   :  { %4035 = vmatpush1.bf16.msra.mxu1 %v5441_v8 }
 0x5ba   :  { %4036 = vmatprep.subr.bf16.mxu1 %v5446_v9 }
 0x5bd   :  { %4037 = vmatpush1.bf16.msra.mxu1 %v5444_v45 }
 0x5be   :  { %4038 = vmatprep.subr.bf16.mxu1 %v5449_v10 }
 0x5c1   :  { %4039 = vmatpush1.bf16.msra.mxu1 %v5447_v11 }
 0x5c2   :  { %4040 = vmatprep.subr.bf16.mxu1 %v5452_v17 }
 0x5c5   :  { %4041 = vmatpush1.bf16.msra.mxu1 %v5450_v12 }
 0x5c6   :  { %4042 = vmatprep.subr.bf16.mxu1 %v5455_v13 }
 0x5c9   :  { %4043 = vmatpush1.bf16.msra.mxu1 %v5453_v43 }
 0x5cc   :  { %4045 = vmatmul.mubr.bf16.vlgmr.msra.gmra.mrb[12].mxu1 %v3340_v14 }
 0x69f   :  { %v4046_v24 = vpop.f32.mrb[12].mxu1 }
 0x6a0   :  { %v4652_v26 = vadd.f32 %v4046_v24, %v3443_v21  ;;  %v4048_v27 = vpop.f32.mrb[13].mxu1 }
 0x6a1   :  { %v4653_v28 = vadd.f32 %v4048_v27, %v3447_v22  ;;  %v4050_v29 = vpop.f32.mrb[14].mxu1 }
 0x6a2   :  { %v4085_v30 = vmul.f32 %v4652_v26, %v4078_v23  ;;  %v4051_v31 = vpop.f32.mrb[15].mxu1 }
 0x6a3   :  { %v4086_v32 = vmul.f32 %v4653_v28, %v4082_v25 }
 0x6a4   :  { %v4087_v33 = vsel %vm4067_vm0, %v4085_v30, 0.0 }
 0x6a5   :  { %v4088_v34 = vsel %vm4067_vm0, %v4086_v32, 0.0 }
 0x6a6   :  { %v4089_v35 = vadd.f32 %v4088_v34, %v4087_v33 }
 0x6a8   :  { %4090 = vadd.xlane.f32.xlu0 %v4089_v35 }
 0x735   :  { %v4091_v38 = vpop.xlane.xlu0 %4090 }
 0x736   :  { %v4092_v18 = vadd.f32 %v4091_v38, %v4072_v36 }
 0x738   :  { %v4100_v39 = vadd.f32 %v4645_v37, %v4092_v18 }
 0x73a   :  { %v4104_v40 = vsub.f32 %v4100_v39, %v4103_v20  ;;  %4102 = vst.msk [vmem:[%s6336_s19] sm:$0x3] %vm4101_vm1, %v4100_v39  ;;  %s5820_s19 = scalar_lea.vmem %s4128_s6, 16 }
 0x73b   :  { %p5821_p2 = scmp.ne.s32.totalorder %s4128_s6, %s5820_s19  ;;  %p5826_p4 = scmp.lt.s32.totalorder %s5824_s23, %s5820_s19 }
 0x73c   :  { %v4105_v41 = vmul.f32 %v4104_v40, %v4104_v40 }
 0x73d   :  { %p5827_p5 = por %p5826_p4, %p5825_p3 }
 0x73e   :  { %v4106_v47 = vsel %vm4101_vm1, %v4105_v41, 0.0 }
 0x73f   :  { %4107 = vadd.xlane.f32.xlu1 %v4106_v47  ;;  %p5828_p6 = pnand %p5827_p5, %p5821_p2 }
 0x7cc   :  { %v4108_v49 = vpop.xlane.xlu1 %4107 }
 0x7cd   :  { %v4109_v50 = vrot.slane %v4108_v49, 4 }
 0x7cf   :  { %v4110_v51 = vadd.f32 %v4109_v50, %v4108_v49 }
 0x7d1   :  { %v4111_v52 = vrot.slane %v4110_v51, 2 }
 0x7d3   :  { %v4112_v44 = vadd.f32 %v4111_v52, %v4110_v51 }
 0x7d5   :  { %v4113_v55 = vrot.slane %v4112_v44, 1 }
 0x7d7   :  { %v4114_v53 = vadd.f32 %v4113_v55, %v4112_v44 }
 0x7d9   :  { %4686 = vpush %v4114_v53 }
 0x80a   :  { %s4687_s1 = spop %4686 }
 0x80b   :  { %v4116_v56 = vstv %s4687_s1 }
 0x80c   :  { %v4118_v57 = vmul.f32 0.5, %v4116_v56 }
 0x80e   :  { %4120 = vst.msk [vmem:[#allocation29] sm:$0x1] %vm4119_vm2, %v4118_v57 }
 0x80f   :  { %5831 = shalt.err (!%p5828_p6)
}
 0x810   :  { %s5832_s5 = scalar_lea.hbm %s6335_s18, 16 }
 0x811   :  { %p5833_p7 = scmp.ne.s32.totalorder %s6335_s18, %s5832_s5  ;;  %p5836_p8 = scmp.lt.u32.totalorder %s5832_s5, %s6335_s18 }
 0x813   :  { %p5838_p9 = pnand %p5836_p8, %p5833_p7 }
 0x815   :  { %5841 = shalt.err (!%p5838_p9)
}
 0x816   :  { %4130 = dma.vmem_to_hbm [thread:$0]  %s4128_s6, 16, %s6335_s18, [#allocation5]  }
 0x817   :  { %5860 = dma.done.wait [#allocation5], 16  }
 0x818   :  { %5861 = vsyncadd [#allocation5], 4294967280 }
 0x819   :  { %4138 = vsyncpa [#allocation4], 1 }
 0x81a   :  { %4139 = vsyncpa [#allocation7], 1 }
 0x81b   :  { %4140 = vsyncpa [#allocation10], 1 }
 0x81c   :  { %4141 = vsyncpa [#allocation13], 1 }
 0x81d   :  { %4142 = vsyncpa [#allocation16], 1 }
 0x81e   :  { %4143 = vsyncpa [#allocation19], 1 }
 0x81f   :  { %4144 = vsyncpa [#allocation22], 1 }
 0x820   :  { %4145 = vsyncpa [#allocation25], 1 }
 0x821   :  { %4146 = vsyncpa [#allocation28], 1 }
 0x822   :  { %4147 = vsyncpa [#allocation5], 1 }

</bundles_post_ra>
